<compile_context>
chip_gen: v7x
topology: tpu7x:2x2x1
jax: 0.10.0
libtpu: 0.0.40
codegen_flags: <defaults>
</compile_context>

<pallas_src>
import functools

import jax
import jax.numpy as jnp
from jax.experimental import pallas as pl
from jax.experimental.pallas import tpu as pltpu


# ----------------------------- small config (SMALL shapes) -----------------------------
BATCH = 2
SEQ = 16
HIDDEN = 128
N_HEADS = 4
HEAD_DIM = HIDDEN // N_HEADS
INTERMEDIATE = 256
N_LAYERS = 2          # scaled-down stand-in for the 12-layer encoder
VOCAB = 128
MAX_POS = 64
TYPE_VOCAB = 2
NUM_CLASS = 4
CLASS_PAD = 128       # lane-dense padded classifier output width
LN_EPS = 1e-12
PAD_IDX = 1           # RoBERTa padding_idx used for position embeddings


def _layernorm_rows(z, g, b, eps):
    mu = jnp.mean(z, axis=-1, keepdims=True)
    var = jnp.mean((z - mu) ** 2, axis=-1, keepdims=True)
    return (z - mu) * jax.lax.rsqrt(var + eps) * g + b


# ----------------------------- the fused encoder kernel -----------------------------
def _encoder_kernel(x_ref, mask_ref, eg_ref, eb_ref,
                    wqkv_ref, bqkv_ref, wo_ref, bo_ref, g1_ref, b1_ref,
                    wi_ref, bi_ref, wo2_ref, bo2_ref, g2_ref, b2_ref,
                    pw_ref, pb_ref, fw_ref, fb_ref,
                    o_ref, h_ref,
                    *, batch, seq, n_heads, head_dim, eps, num_class):
    """One grid step == one full transformer layer.

    Layer 0 additionally folds in the embedding LayerNorm; the last layer additionally
    runs the fused pooler + classifier + softmax head. The residual stream is resident
    in the `h_ref` VMEM scratch across all grid steps.
    """
    hidden = n_heads * head_dim
    groups = batch * n_heads
    scale = 1.0 / (head_dim ** 0.5)
    layer = pl.program_id(0)

    # ---- layer 0: embedding LayerNorm -> init resident residual stream ----
    @pl.when(layer == 0)
    def _():
        x = x_ref[...].astype(jnp.float32)
        h_ref[...] = _layernorm_rows(x, eg_ref[...], eb_ref[...], eps)

    h = h_ref[...]                                                    # [B*S, H] f32

    # ---- attention block: single QKV matmul ----
    qkv = jnp.dot(h.astype(jnp.bfloat16), wqkv_ref[...],
                  preferred_element_type=jnp.float32) + bqkv_ref[...]  # [B*S, 3H]

    # Pack (batch, head) into ONE leading batch dim so scores/context/softmax run as
    # dense batched ops instead of per-(batch,head) unrolled [S,Dh]x[Dh,S] matmuls.
    q3 = jnp.stack([qkv[b * seq:(b + 1) * seq, hd * head_dim:(hd + 1) * head_dim]
                    for b in range(batch) for hd in range(n_heads)], axis=0)
    k3 = jnp.stack([qkv[b * seq:(b + 1) * seq,
                        hidden + hd * head_dim:hidden + (hd + 1) * head_dim]
                    for b in range(batch) for hd in range(n_heads)], axis=0)
    v3 = jnp.stack([qkv[b * seq:(b + 1) * seq,
                        2 * hidden + hd * head_dim:2 * hidden + (hd + 1) * head_dim]
                    for b in range(batch) for hd in range(n_heads)], axis=0)
    m3 = jnp.stack([mask_ref[b:b + 1, :] for b in range(batch)
                    for _ in range(n_heads)], axis=0)                 # [G, 1, S]

    s = jnp.einsum('gqd,gkd->gqk', q3, k3,
                   preferred_element_type=jnp.float32) * scale + m3   # [G, S, S]
    s = s - jnp.max(s, axis=-1, keepdims=True)
    p = jnp.exp(s)
    p = p * pl.reciprocal(jnp.sum(p, axis=-1, keepdims=True), approx=True)
    ctx = jnp.einsum('gqk,gkd->gqd', p, v3,
                     preferred_element_type=jnp.float32)              # [G, S, Dh]

    # Re-pack heads into lane-contiguous [B*S, H] and do ONE dense output projection.
    ctx_flat = jnp.concatenate(
        [jnp.concatenate([ctx[b * n_heads + hd] for hd in range(n_heads)], axis=-1)
         for b in range(batch)], axis=0)                              # [B*S, H]
    attn = jnp.dot(ctx_flat.astype(jnp.bfloat16), wo_ref[...],
                   preferred_element_type=jnp.float32) + bo_ref[...]
    h1 = _layernorm_rows(attn + h, g1_ref[...], b1_ref[...], eps)

    # ---- FFN block ----
    f = jnp.dot(h1.astype(jnp.bfloat16), wi_ref[...],
                preferred_element_type=jnp.float32) + bi_ref[...]
    # TODO(synk): HF BERT/RoBERTa use exact erf-GELU; tanh approximation used here.
    f = jax.nn.gelu(f, approximate=True)
    f = jnp.dot(f.astype(jnp.bfloat16), wo2_ref[...],
                preferred_element_type=jnp.float32) + bo2_ref[...]
    h2 = _layernorm_rows(f + h1, g2_ref[...], b2_ref[...], eps)
    h_ref[...] = h2

    # ---- last layer: fused pooler (tanh dense on [CLS]) + classifier fc + softmax ----
    @pl.when(layer == pl.num_programs(0) - 1)
    def _():
        x0 = jnp.concatenate([h2[b * seq:b * seq + 1, :] for b in range(batch)],
                             axis=0)                                   # [B, H]
        pooled = jnp.tanh(jnp.dot(x0.astype(jnp.bfloat16), pw_ref[...],
                                  preferred_element_type=jnp.float32) + pb_ref[...])
        logits = jnp.dot(pooled.astype(jnp.bfloat16), fw_ref[...],
                         preferred_element_type=jnp.float32) + fb_ref[...]  # [B, 128]
        cols = jax.lax.broadcasted_iota(jnp.int32, logits.shape, 1)
        logits = jnp.where(cols < num_class, logits, -1e30)            # kill pad lanes
        logits = logits - jnp.max(logits, axis=-1, keepdims=True)
        e = jnp.exp(logits)
        # Exact reciprocal: final probabilities should sum to 1 (runs once).
        probs = e * pl.reciprocal(jnp.sum(e, axis=-1, keepdims=True), approx=False)
        o_ref[...] = probs.astype(o_ref.dtype)


# ----------------------------- pallas_call wrapper -----------------------------
def encoder_forward(x_emb, mask_add, params):
    BS, H = x_emb.shape
    L = params["wqkv"].shape[0]

    def const_spec(shape):
        return pl.BlockSpec(shape, lambda l: (0, 0))

    def layer_spec(arr):
        # Stacked [L, a, b] weight: fetch layer l's slice, squeeze the layer dim.
        return pl.BlockSpec((None,) + arr.shape[1:], lambda l: (l, 0, 0))

    in_specs = [
        const_spec((BS, H)),                                # x_emb
        const_spec((BATCH, SEQ)),                           # additive attention mask
        const_spec((1, H)), const_spec((1, H)),             # embedding LN
        layer_spec(params["wqkv"]), layer_spec(params["bqkv"]),
        layer_spec(params["wo"]), layer_spec(params["bo"]),
        layer_spec(params["ln1_g"]), layer_spec(params["ln1_b"]),
        layer_spec(params["wi"]), layer_spec(params["bi"]),
        layer_spec(params["wo2"]), layer_spec(params["bo2"]),
        layer_spec(params["ln2_g"]), layer_spec(params["ln2_b"]),
        const_spec((H, H)), const_spec((1, H)),             # pooler
        const_spec((H, CLASS_PAD)), const_spec((1, CLASS_PAD)),  # classifier (lane-padded)
    ]

    kernel = functools.partial(
        _encoder_kernel, batch=BATCH, seq=SEQ, n_heads=N_HEADS,
        head_dim=HEAD_DIM, eps=LN_EPS, num_class=NUM_CLASS)

    probs_pad = pl.pallas_call(
        kernel,
        grid=(L,),
        in_specs=in_specs,
        out_specs=pl.BlockSpec((BATCH, CLASS_PAD), lambda l: (0, 0)),
        out_shape=jax.ShapeDtypeStruct((BATCH, CLASS_PAD), jnp.float32),
        scratch_shapes=[pltpu.VMEM((BS, H), jnp.float32)],   # resident residual stream
        compiler_params=pltpu.CompilerParams(
            dimension_semantics=("arbitrary",)),
    )(x_emb, mask_add, params["emb_ln_g"], params["emb_ln_b"],
      params["wqkv"], params["bqkv"], params["wo"], params["bo"],
      params["ln1_g"], params["ln1_b"],
      params["wi"], params["bi"], params["wo2"], params["bo2"],
      params["ln2_g"], params["ln2_b"],
      params["pool_w"], params["pool_b"], params["fc_w_pad"], params["fc_b_pad"])

    return probs_pad[:, :NUM_CLASS]


# ----------------------------- parameter init -----------------------------
def init_params(key):
    ks = iter(jax.random.split(key, 32))

    def nrm(shape, dtype=jnp.bfloat16):
        return (0.02 * jax.random.normal(next(ks), shape, jnp.float32)).astype(dtype)

    H, I, L = HIDDEN, INTERMEDIATE, N_LAYERS
    fc_w = nrm((H, NUM_CLASS))
    fc_w_pad = jnp.zeros((H, CLASS_PAD), jnp.bfloat16).at[:, :NUM_CLASS].set(fc_w)
    fc_b_pad = jnp.zeros((1, CLASS_PAD), jnp.float32)

    return {
        "word_emb": nrm((VOCAB, H), jnp.float32),
        "pos_emb": nrm((MAX_POS, H), jnp.float32),
        "type_emb": nrm((TYPE_VOCAB, H), jnp.float32),
        "emb_ln_g": jnp.ones((1, H), jnp.float32),
        "emb_ln_b": jnp.zeros((1, H), jnp.float32),
        # Stacked per-layer weights, leading layer dim (pipelined by BlockSpec).
        "wqkv": nrm((L, H, 3 * H)),                          # [wq | wk | wv]
        "bqkv": jnp.zeros((L, 1, 3 * H), jnp.float32),
        "wo": nrm((L, H, H)),
        "bo": jnp.zeros((L, 1, H), jnp.float32),
        "ln1_g": jnp.ones((L, 1, H), jnp.float32),
        "ln1_b": jnp.zeros((L, 1, H), jnp.float32),
        "wi": nrm((L, H, I)),
        "bi": jnp.zeros((L, 1, I), jnp.float32),
        "wo2": nrm((L, I, H)),
        "bo2": jnp.zeros((L, 1, H), jnp.float32),
        "ln2_g": jnp.ones((L, 1, H), jnp.float32),
        "ln2_b": jnp.zeros((L, 1, H), jnp.float32),
        "pool_w": nrm((H, H)),
        "pool_b": jnp.zeros((1, H), jnp.float32),
        "fc_w_pad": fc_w_pad,
        "fc_b_pad": fc_b_pad,
    }


# ----------------------------- forward pass -----------------------------
def roberta_forward(params, input_ids, attention_mask, token_type_ids):
    B, S = input_ids.shape
    H = HIDDEN

    # RoBERTa position ids: real tokens get cumulative positions starting at
    # padding_idx + 1; pad positions stay at padding_idx.
    am = attention_mask.astype(jnp.int32)
    pos_ids = jnp.cumsum(am, axis=1) * am + PAD_IDX

    # TODO(synk): dynamic embedding-table gather left in plain JAX (no clean tiny-kernel Pallas form).
    emb = (jnp.take(params["word_emb"], input_ids, axis=0)
           + jnp.take(params["pos_emb"], pos_ids, axis=0)
           + jnp.take(params["type_emb"], token_type_ids, axis=0))          # [B,S,H]
    x_emb = emb.reshape(B * S, H)

    # Additive attention mask, kept [B, S]; broadcast inside the kernel.
    mask_add = (1.0 - attention_mask.astype(jnp.float32)) * -10000.0

    # Whole encoder + pooler + classifier + softmax in one fused pallas_call.
    return encoder_forward(x_emb, mask_add, params)                          # [B, C]


# ----------------------------- main -----------------------------
if __name__ == "__main__":
    key = jax.random.PRNGKey(0)
    kp, ki = jax.random.split(key, 2)

    params = init_params(kp)

    input_ids = jax.random.randint(ki, (BATCH, SEQ), 0, VOCAB, dtype=jnp.int32)
    # attention mask: first batch fully attended, second batch last 4 tokens padded
    attention_mask = jnp.ones((BATCH, SEQ), dtype=jnp.int32)
    attention_mask = attention_mask.at[1, SEQ - 4:].set(0)
    token_type_ids = jnp.zeros((BATCH, SEQ), dtype=jnp.int32)

    fwd = jax.jit(roberta_forward)
    out = fwd(params, input_ids, attention_mask, token_type_ids)
    out = jax.block_until_ready(out)

    assert out.shape == (BATCH, NUM_CLASS)
    # rows of a softmax must sum to 1
    assert jnp.allclose(jnp.sum(out, axis=1), 1.0, atol=1e-5)
    print("KERNEL_OK")
</pallas_src>

<mosaic_0001>
module attributes {stable_mosaic.version = 11 : i64} {
  func.func @_encoder_kernel(%arg0: i32, %arg1: memref<32x128xf32, #tpu.memory_space<vmem>>, %arg2: memref<2x16xf32, #tpu.memory_space<vmem>>, %arg3: memref<1x128xf32, #tpu.memory_space<vmem>>, %arg4: memref<1x128xf32, #tpu.memory_space<vmem>>, %arg5: memref<1x128x384xbf16, #tpu.memory_space<vmem>>, %arg6: memref<1x1x384xf32, #tpu.memory_space<vmem>>, %arg7: memref<1x128x128xbf16, #tpu.memory_space<vmem>>, %arg8: memref<1x1x128xf32, #tpu.memory_space<vmem>>, %arg9: memref<1x1x128xf32, #tpu.memory_space<vmem>>, %arg10: memref<1x1x128xf32, #tpu.memory_space<vmem>>, %arg11: memref<1x128x256xbf16, #tpu.memory_space<vmem>>, %arg12: memref<1x1x256xf32, #tpu.memory_space<vmem>>, %arg13: memref<1x256x128xbf16, #tpu.memory_space<vmem>>, %arg14: memref<1x1x128xf32, #tpu.memory_space<vmem>>, %arg15: memref<1x1x128xf32, #tpu.memory_space<vmem>>, %arg16: memref<1x1x128xf32, #tpu.memory_space<vmem>>, %arg17: memref<128x128xbf16, #tpu.memory_space<vmem>>, %arg18: memref<1x128xf32, #tpu.memory_space<vmem>>, %arg19: memref<128x128xbf16, #tpu.memory_space<vmem>>, %arg20: memref<1x128xf32, #tpu.memory_space<vmem>>, %arg21: memref<2x128xf32, #tpu.memory_space<vmem>>, %arg22: memref<32x128xf32, #tpu.memory_space<vmem>>) attributes {dimension_semantics = [#tpu.dimension_semantics<arbitrary>], iteration_bounds = array<i64: 2>, scalar_prefetch = 0 : i64, scratch_operands = 1 : i64, tpu.core_type = #tpu.core_type<tc>, window_params = [{pipeline_mode = #tpu.pipeline_mode<synchronous>, transform_indices = @transform_0, window_bounds = array<i64: 32, 128>}, {pipeline_mode = #tpu.pipeline_mode<synchronous>, transform_indices = @transform_1, window_bounds = array<i64: 2, 16>}, {pipeline_mode = #tpu.pipeline_mode<synchronous>, transform_indices = @transform_2, window_bounds = array<i64: 1, 128>}, {pipeline_mode = #tpu.pipeline_mode<synchronous>, transform_indices = @transform_3, window_bounds = array<i64: 1, 128>}, {transform_indices = @transform_4, window_bounds = array<i64: 1, 128, 384>}, {transform_indices = @transform_5, window_bounds = array<i64: 1, 1, 384>}, {transform_indices = @transform_6, window_bounds = array<i64: 1, 128, 128>}, {transform_indices = @transform_7, window_bounds = array<i64: 1, 1, 128>}, {transform_indices = @transform_8, window_bounds = array<i64: 1, 1, 128>}, {transform_indices = @transform_9, window_bounds = array<i64: 1, 1, 128>}, {transform_indices = @transform_10, window_bounds = array<i64: 1, 128, 256>}, {transform_indices = @transform_11, window_bounds = array<i64: 1, 1, 256>}, {transform_indices = @transform_12, window_bounds = array<i64: 1, 256, 128>}, {transform_indices = @transform_13, window_bounds = array<i64: 1, 1, 128>}, {transform_indices = @transform_14, window_bounds = array<i64: 1, 1, 128>}, {transform_indices = @transform_15, window_bounds = array<i64: 1, 1, 128>}, {pipeline_mode = #tpu.pipeline_mode<synchronous>, transform_indices = @transform_16, window_bounds = array<i64: 128, 128>}, {pipeline_mode = #tpu.pipeline_mode<synchronous>, transform_indices = @transform_17, window_bounds = array<i64: 1, 128>}, {pipeline_mode = #tpu.pipeline_mode<synchronous>, transform_indices = @transform_18, window_bounds = array<i64: 128, 128>}, {pipeline_mode = #tpu.pipeline_mode<synchronous>, transform_indices = @transform_19, window_bounds = array<i64: 1, 128>}, {pipeline_mode = #tpu.pipeline_mode<synchronous>, transform_indices = @transform_20, window_bounds = array<i64: 2, 128>}]} {
    %c0_i32 = arith.constant 0 : i32
    %0 = arith.cmpi eq, %arg0, %c0_i32 : i32
    %1 = arith.extui %0 : i1 to i32
    %c0_i32_0 = arith.constant 0 : i32
    %2 = arith.cmpi ne, %1, %c0_i32_0 : i32
    scf.if %2 {
      %c0_78 = arith.constant 0 : index
      %c0_79 = arith.constant 0 : index
      %210 = vector.load %arg1[%c0_78, %c0_79] : memref<32x128xf32, #tpu.memory_space<vmem>>, vector<32x128xf32>
      %c0_80 = arith.constant 0 : index
      %c0_81 = arith.constant 0 : index
      %211 = vector.load %arg3[%c0_80, %c0_81] : memref<1x128xf32, #tpu.memory_space<vmem>>, vector<1x128xf32>
      %c0_82 = arith.constant 0 : index
      %c0_83 = arith.constant 0 : index
      %212 = vector.load %arg4[%c0_82, %c0_83] : memref<1x128xf32, #tpu.memory_space<vmem>>, vector<1x128xf32>
      %cst_84 = arith.constant dense<0.000000e+00> : vector<32xf32>
      %213 = vector.multi_reduction <add>, %210, %cst_84 [1] : vector<32x128xf32> to vector<32xf32>
      %214 = vector.shape_cast %213 : vector<32xf32> to vector<32x1xf32>
      %cst_85 = arith.constant 1.280000e+02 : f32
      %215 = vector.broadcast %cst_85 : f32 to vector<32x1xf32>
      %216 = arith.divf %214, %215 : vector<32x1xf32>
      %217 = vector.broadcast %216 : vector<32x1xf32> to vector<32x128xf32>
      %218 = arith.subf %210, %217 : vector<32x128xf32>
      %219 = arith.mulf %218, %218 : vector<32x128xf32>
      %cst_86 = arith.constant dense<0.000000e+00> : vector<32xf32>
      %220 = vector.multi_reduction <add>, %219, %cst_86 [1] : vector<32x128xf32> to vector<32xf32>
      %221 = vector.shape_cast %220 : vector<32xf32> to vector<32x1xf32>
      %cst_87 = arith.constant 1.280000e+02 : f32
      %222 = vector.broadcast %cst_87 : f32 to vector<32x1xf32>
      %223 = arith.divf %221, %222 : vector<32x1xf32>
      %224 = vector.broadcast %216 : vector<32x1xf32> to vector<32x128xf32>
      %225 = arith.subf %210, %224 : vector<32x128xf32>
      %cst_88 = arith.constant 9.99999996E-13 : f32
      %226 = vector.broadcast %cst_88 : f32 to vector<32x1xf32>
      %227 = arith.addf %223, %226 : vector<32x1xf32>
      %228 = math.rsqrt %227 : vector<32x1xf32>
      %229 = vector.broadcast %228 : vector<32x1xf32> to vector<32x128xf32>
      %230 = arith.mulf %225, %229 : vector<32x128xf32>
      %231 = vector.broadcast %211 : vector<1x128xf32> to vector<32x128xf32>
      %232 = arith.mulf %230, %231 : vector<32x128xf32>
      %233 = vector.broadcast %212 : vector<1x128xf32> to vector<32x128xf32>
      %234 = arith.addf %232, %233 : vector<32x128xf32>
      %c0_89 = arith.constant 0 : index
      %c0_90 = arith.constant 0 : index
      %235 = vector.load %arg22[%c0_89, %c0_90] : memref<32x128xf32, #tpu.memory_space<vmem>>, vector<32x128xf32>
      tpu.vector_store %arg22[%c0_89, %c0_90], %234 {strides = array<i32>} : memref<32x128xf32, #tpu.memory_space<vmem>>, vector<32x128xf32>,
    } else {
    }
    %c0 = arith.constant 0 : index
    %c0_1 = arith.constant 0 : index
    %3 = vector.load %arg22[%c0, %c0_1] : memref<32x128xf32, #tpu.memory_space<vmem>>, vector<32x128xf32>
    %4 = arith.truncf %3 : vector<32x128xf32> to vector<32x128xbf16>
    %c0_2 = arith.constant 0 : index
    %c0_3 = arith.constant 0 : index
    %c0_4 = arith.constant 0 : index
    %5 = vector.load %arg5[%c0_2, %c0_3, %c0_4] : memref<1x128x384xbf16, #tpu.memory_space<vmem>>, vector<1x128x384xbf16>
    %6 = vector.shape_cast %5 : vector<1x128x384xbf16> to vector<128x384xbf16>
    %cst = arith.constant dense<0.000000e+00> : vector<32x384xf32>
    %7 = tpu.matmul %4, %6, %cst {dimension_numbers = #tpu.dot_dimension_numbers<[1], [0], [0], [1], [0, 0, 1, 1], [], []>} : vector<32x128xbf16>, vector<128x384xbf16>, vector<32x384xf32> -> vector<32x384xf32>
    %c0_5 = arith.constant 0 : index
    %c0_6 = arith.constant 0 : index
    %c0_7 = arith.constant 0 : index
    %8 = vector.load %arg6[%c0_5, %c0_6, %c0_7] : memref<1x1x384xf32, #tpu.memory_space<vmem>>, vector<1x1x384xf32>
    %9 = vector.shape_cast %8 : vector<1x1x384xf32> to vector<1x384xf32>
    %10 = vector.broadcast %9 : vector<1x384xf32> to vector<32x384xf32>
    %11 = arith.addf %7, %10 : vector<32x384xf32>
    %12 = vector.extract_strided_slice %11 {offsets = [0, 0], sizes = [16, 32], strides = [1, 1]} : vector<32x384xf32> to vector<16x32xf32>
    %13 = vector.extract_strided_slice %11 {offsets = [0, 32], sizes = [16, 32], strides = [1, 1]} : vector<32x384xf32> to vector<16x32xf32>
    %14 = vector.extract_strided_slice %11 {offsets = [0, 64], sizes = [16, 32], strides = [1, 1]} : vector<32x384xf32> to vector<16x32xf32>
    %15 = vector.extract_strided_slice %11 {offsets = [0, 96], sizes = [16, 32], strides = [1, 1]} : vector<32x384xf32> to vector<16x32xf32>
    %16 = vector.extract_strided_slice %11 {offsets = [16, 0], sizes = [16, 32], strides = [1, 1]} : vector<32x384xf32> to vector<16x32xf32>
    %17 = vector.extract_strided_slice %11 {offsets = [16, 32], sizes = [16, 32], strides = [1, 1]} : vector<32x384xf32> to vector<16x32xf32>
    %18 = vector.extract_strided_slice %11 {offsets = [16, 64], sizes = [16, 32], strides = [1, 1]} : vector<32x384xf32> to vector<16x32xf32>
    %19 = vector.extract_strided_slice %11 {offsets = [16, 96], sizes = [16, 32], strides = [1, 1]} : vector<32x384xf32> to vector<16x32xf32>
    %20 = vector.shape_cast %12 : vector<16x32xf32> to vector<1x16x32xf32>
    %21 = vector.shape_cast %13 : vector<16x32xf32> to vector<1x16x32xf32>
    %22 = vector.shape_cast %14 : vector<16x32xf32> to vector<1x16x32xf32>
    %23 = vector.shape_cast %15 : vector<16x32xf32> to vector<1x16x32xf32>
    %24 = vector.shape_cast %16 : vector<16x32xf32> to vector<1x16x32xf32>
    %25 = vector.shape_cast %17 : vector<16x32xf32> to vector<1x16x32xf32>
    %26 = vector.shape_cast %18 : vector<16x32xf32> to vector<1x16x32xf32>
    %27 = vector.shape_cast %19 : vector<16x32xf32> to vector<1x16x32xf32>
    %28 = tpu.concatenate %20, %21, %22, %23, %24, %25, %26, %27 in 0 : vector<1x16x32xf32>, vector<1x16x32xf32>, vector<1x16x32xf32>, vector<1x16x32xf32>, vector<1x16x32xf32>, vector<1x16x32xf32>, vector<1x16x32xf32>, vector<1x16x32xf32> -> vector<8x16x32xf32>
    %29 = vector.extract_strided_slice %11 {offsets = [0, 128], sizes = [16, 32], strides = [1, 1]} : vector<32x384xf32> to vector<16x32xf32>
    %30 = vector.extract_strided_slice %11 {offsets = [0, 160], sizes = [16, 32], strides = [1, 1]} : vector<32x384xf32> to vector<16x32xf32>
    %31 = vector.extract_strided_slice %11 {offsets = [0, 192], sizes = [16, 32], strides = [1, 1]} : vector<32x384xf32> to vector<16x32xf32>
    %32 = vector.extract_strided_slice %11 {offsets = [0, 224], sizes = [16, 32], strides = [1, 1]} : vector<32x384xf32> to vector<16x32xf32>
    %33 = vector.extract_strided_slice %11 {offsets = [16, 128], sizes = [16, 32], strides = [1, 1]} : vector<32x384xf32> to vector<16x32xf32>
    %34 = vector.extract_strided_slice %11 {offsets = [16, 160], sizes = [16, 32], strides = [1, 1]} : vector<32x384xf32> to vector<16x32xf32>
    %35 = vector.extract_strided_slice %11 {offsets = [16, 192], sizes = [16, 32], strides = [1, 1]} : vector<32x384xf32> to vector<16x32xf32>
    %36 = vector.extract_strided_slice %11 {offsets = [16, 224], sizes = [16, 32], strides = [1, 1]} : vector<32x384xf32> to vector<16x32xf32>
    %37 = vector.shape_cast %29 : vector<16x32xf32> to vector<1x16x32xf32>
    %38 = vector.shape_cast %30 : vector<16x32xf32> to vector<1x16x32xf32>
    %39 = vector.shape_cast %31 : vector<16x32xf32> to vector<1x16x32xf32>
    %40 = vector.shape_cast %32 : vector<16x32xf32> to vector<1x16x32xf32>
    %41 = vector.shape_cast %33 : vector<16x32xf32> to vector<1x16x32xf32>
    %42 = vector.shape_cast %34 : vector<16x32xf32> to vector<1x16x32xf32>
    %43 = vector.shape_cast %35 : vector<16x32xf32> to vector<1x16x32xf32>
    %44 = vector.shape_cast %36 : vector<16x32xf32> to vector<1x16x32xf32>
    %45 = tpu.concatenate %37, %38, %39, %40, %41, %42, %43, %44 in 0 : vector<1x16x32xf32>, vector<1x16x32xf32>, vector<1x16x32xf32>, vector<1x16x32xf32>, vector<1x16x32xf32>, vector<1x16x32xf32>, vector<1x16x32xf32>, vector<1x16x32xf32> -> vector<8x16x32xf32>
    %46 = vector.extract_strided_slice %11 {offsets = [0, 256], sizes = [16, 32], strides = [1, 1]} : vector<32x384xf32> to vector<16x32xf32>
    %47 = vector.extract_strided_slice %11 {offsets = [0, 288], sizes = [16, 32], strides = [1, 1]} : vector<32x384xf32> to vector<16x32xf32>
    %48 = vector.extract_strided_slice %11 {offsets = [0, 320], sizes = [16, 32], strides = [1, 1]} : vector<32x384xf32> to vector<16x32xf32>
    %49 = vector.extract_strided_slice %11 {offsets = [0, 352], sizes = [16, 32], strides = [1, 1]} : vector<32x384xf32> to vector<16x32xf32>
    %50 = vector.extract_strided_slice %11 {offsets = [16, 256], sizes = [16, 32], strides = [1, 1]} : vector<32x384xf32> to vector<16x32xf32>
    %51 = vector.extract_strided_slice %11 {offsets = [16, 288], sizes = [16, 32], strides = [1, 1]} : vector<32x384xf32> to vector<16x32xf32>
    %52 = vector.extract_strided_slice %11 {offsets = [16, 320], sizes = [16, 32], strides = [1, 1]} : vector<32x384xf32> to vector<16x32xf32>
    %53 = vector.extract_strided_slice %11 {offsets = [16, 352], sizes = [16, 32], strides = [1, 1]} : vector<32x384xf32> to vector<16x32xf32>
    %54 = vector.shape_cast %46 : vector<16x32xf32> to vector<1x16x32xf32>
    %55 = vector.shape_cast %47 : vector<16x32xf32> to vector<1x16x32xf32>
    %56 = vector.shape_cast %48 : vector<16x32xf32> to vector<1x16x32xf32>
    %57 = vector.shape_cast %49 : vector<16x32xf32> to vector<1x16x32xf32>
    %58 = vector.shape_cast %50 : vector<16x32xf32> to vector<1x16x32xf32>
    %59 = vector.shape_cast %51 : vector<16x32xf32> to vector<1x16x32xf32>
    %60 = vector.shape_cast %52 : vector<16x32xf32> to vector<1x16x32xf32>
    %61 = vector.shape_cast %53 : vector<16x32xf32> to vector<1x16x32xf32>
    %62 = tpu.concatenate %54, %55, %56, %57, %58, %59, %60, %61 in 0 : vector<1x16x32xf32>, vector<1x16x32xf32>, vector<1x16x32xf32>, vector<1x16x32xf32>, vector<1x16x32xf32>, vector<1x16x32xf32>, vector<1x16x32xf32>, vector<1x16x32xf32> -> vector<8x16x32xf32>
    %c0_8 = arith.constant 0 : index
    %c0_9 = arith.constant 0 : index
    %63 = vector.load %arg2[%c0_8, %c0_9] : memref<2x16xf32, #tpu.memory_space<vmem>>, vector<1x16xf32>
    %c0_10 = arith.constant 0 : index
    %c0_11 = arith.constant 0 : index
    %64 = vector.load %arg2[%c0_10, %c0_11] : memref<2x16xf32, #tpu.memory_space<vmem>>, vector<1x16xf32>
    %c0_12 = arith.constant 0 : index
    %c0_13 = arith.constant 0 : index
    %65 = vector.load %arg2[%c0_12, %c0_13] : memref<2x16xf32, #tpu.memory_space<vmem>>, vector<1x16xf32>
    %c0_14 = arith.constant 0 : index
    %c0_15 = arith.constant 0 : index
    %66 = vector.load %arg2[%c0_14, %c0_15] : memref<2x16xf32, #tpu.memory_space<vmem>>, vector<1x16xf32>
    %c1 = arith.constant 1 : index
    %c0_16 = arith.constant 0 : index
    %67 = vector.load %arg2[%c1, %c0_16] : memref<2x16xf32, #tpu.memory_space<vmem>>, vector<1x16xf32>
    %c1_17 = arith.constant 1 : index
    %c0_18 = arith.constant 0 : index
    %68 = vector.load %arg2[%c1_17, %c0_18] : memref<2x16xf32, #tpu.memory_space<vmem>>, vector<1x16xf32>
    %c1_19 = arith.constant 1 : index
    %c0_20 = arith.constant 0 : index
    %69 = vector.load %arg2[%c1_19, %c0_20] : memref<2x16xf32, #tpu.memory_space<vmem>>, vector<1x16xf32>
    %c1_21 = arith.constant 1 : index
    %c0_22 = arith.constant 0 : index
    %70 = vector.load %arg2[%c1_21, %c0_22] : memref<2x16xf32, #tpu.memory_space<vmem>>, vector<1x16xf32>
    %71 = vector.shape_cast %63 : vector<1x16xf32> to vector<1x1x16xf32>
    %72 = vector.shape_cast %64 : vector<1x16xf32> to vector<1x1x16xf32>
    %73 = vector.shape_cast %65 : vector<1x16xf32> to vector<1x1x16xf32>
    %74 = vector.shape_cast %66 : vector<1x16xf32> to vector<1x1x16xf32>
    %75 = vector.shape_cast %67 : vector<1x16xf32> to vector<1x1x16xf32>
    %76 = vector.shape_cast %68 : vector<1x16xf32> to vector<1x1x16xf32>
    %77 = vector.shape_cast %69 : vector<1x16xf32> to vector<1x1x16xf32>
    %78 = vector.shape_cast %70 : vector<1x16xf32> to vector<1x1x16xf32>
    %79 = tpu.concatenate %71, %72, %73, %74, %75, %76, %77, %78 in 0 : vector<1x1x16xf32>, vector<1x1x16xf32>, vector<1x1x16xf32>, vector<1x1x16xf32>, vector<1x1x16xf32>, vector<1x1x16xf32>, vector<1x1x16xf32>, vector<1x1x16xf32> -> vector<8x1x16xf32>
    "tpu.trace_start"() <{level = 10 : i32, message = "gqd,gkd->gqk"}> : () -> ()
    %cst_23 = arith.constant dense<0.000000e+00> : vector<8x16x16xf32>
    %80 = tpu.matmul %28, %45, %cst_23 {dimension_numbers = #tpu.dot_dimension_numbers<[2], [2], [1], [1], [0, 0, 0, 1, 1, 1], [0], [0]>} : vector<8x16x32xf32>, vector<8x16x32xf32>, vector<8x16x16xf32> -> vector<8x16x16xf32>
    "tpu.trace_stop"() : () -> ()
    %cst_24 = arith.constant 0.176776692 : f32
    %81 = vector.broadcast %cst_24 : f32 to vector<8x16x16xf32>
    %82 = arith.mulf %80, %81 : vector<8x16x16xf32>
    %83 = vector.broadcast %79 : vector<8x1x16xf32> to vector<8x16x16xf32>
    %84 = arith.addf %82, %83 : vector<8x16x16xf32>
    %cst_25 = arith.constant dense<0xFF800000> : vector<8x16xf32>
    %85 = vector.multi_reduction <maximumf>, %84, %cst_25 [2] : vector<8x16x16xf32> to vector<8x16xf32>
    %86 = vector.shape_cast %85 : vector<8x16xf32> to vector<8x16x1xf32>
    %87 = vector.broadcast %86 : vector<8x16x1xf32> to vector<8x16x16xf32>
    %88 = arith.subf %84, %87 : vector<8x16x16xf32>
    %89 = math.exp %88 : vector<8x16x16xf32>
    %cst_26 = arith.constant dense<0.000000e+00> : vector<8x16xf32>
    %90 = vector.multi_reduction <add>, %89, %cst_26 [2] : vector<8x16x16xf32> to vector<8x16xf32>
    %91 = vector.shape_cast %90 : vector<8x16xf32> to vector<8x16x1xf32>
    %92 = tpu.reciprocal %91 {approx = true} : vector<8x16x1xf32> -> vector<8x16x1xf32>
    %93 = vector.broadcast %92 : vector<8x16x1xf32> to vector<8x16x16xf32>
    %94 = arith.mulf %89, %93 : vector<8x16x16xf32>
    "tpu.trace_start"() <{level = 10 : i32, message = "gqk,gkd->gqd"}> : () -> ()
    %cst_27 = arith.constant dense<0.000000e+00> : vector<8x16x32xf32>
    %95 = tpu.matmul %94, %62, %cst_27 {dimension_numbers = #tpu.dot_dimension_numbers<[2], [1], [1], [2], [0, 0, 0, 1, 1, 2], [0], [0]>} : vector<8x16x16xf32>, vector<8x16x32xf32>, vector<8x16x32xf32> -> vector<8x16x32xf32>
    "tpu.trace_stop"() : () -> ()
    %96 = vector.extract_strided_slice %95 {offsets = [0, 0, 0], sizes = [1, 16, 32], strides = [1, 1, 1]} : vector<8x16x32xf32> to vector<1x16x32xf32>
    %97 = vector.shape_cast %96 : vector<1x16x32xf32> to vector<16x32xf32>
    %98 = vector.extract_strided_slice %95 {offsets = [1, 0, 0], sizes = [1, 16, 32], strides = [1, 1, 1]} : vector<8x16x32xf32> to vector<1x16x32xf32>
    %99 = vector.shape_cast %98 : vector<1x16x32xf32> to vector<16x32xf32>
    %100 = vector.extract_strided_slice %95 {offsets = [2, 0, 0], sizes = [1, 16, 32], strides = [1, 1, 1]} : vector<8x16x32xf32> to vector<1x16x32xf32>
    %101 = vector.shape_cast %100 : vector<1x16x32xf32> to vector<16x32xf32>
    %102 = vector.extract_strided_slice %95 {offsets = [3, 0, 0], sizes = [1, 16, 32], strides = [1, 1, 1]} : vector<8x16x32xf32> to vector<1x16x32xf32>
    %103 = vector.shape_cast %102 : vector<1x16x32xf32> to vector<16x32xf32>
    %104 = tpu.concatenate %97, %99, %101, %103 in 1 : vector<16x32xf32>, vector<16x32xf32>, vector<16x32xf32>, vector<16x32xf32> -> vector<16x128xf32>
    %105 = vector.extract_strided_slice %95 {offsets = [4, 0, 0], sizes = [1, 16, 32], strides = [1, 1, 1]} : vector<8x16x32xf32> to vector<1x16x32xf32>
    %106 = vector.shape_cast %105 : vector<1x16x32xf32> to vector<16x32xf32>
    %107 = vector.extract_strided_slice %95 {offsets = [5, 0, 0], sizes = [1, 16, 32], strides = [1, 1, 1]} : vector<8x16x32xf32> to vector<1x16x32xf32>
    %108 = vector.shape_cast %107 : vector<1x16x32xf32> to vector<16x32xf32>
    %109 = vector.extract_strided_slice %95 {offsets = [6, 0, 0], sizes = [1, 16, 32], strides = [1, 1, 1]} : vector<8x16x32xf32> to vector<1x16x32xf32>
    %110 = vector.shape_cast %109 : vector<1x16x32xf32> to vector<16x32xf32>
    %111 = vector.extract_strided_slice %95 {offsets = [7, 0, 0], sizes = [1, 16, 32], strides = [1, 1, 1]} : vector<8x16x32xf32> to vector<1x16x32xf32>
    %112 = vector.shape_cast %111 : vector<1x16x32xf32> to vector<16x32xf32>
    %113 = tpu.concatenate %106, %108, %110, %112 in 1 : vector<16x32xf32>, vector<16x32xf32>, vector<16x32xf32>, vector<16x32xf32> -> vector<16x128xf32>
    %114 = tpu.concatenate %104, %113 in 0 : vector<16x128xf32>, vector<16x128xf32> -> vector<32x128xf32>
    %115 = arith.truncf %114 : vector<32x128xf32> to vector<32x128xbf16>
    %c0_28 = arith.constant 0 : index
    %c0_29 = arith.constant 0 : index
    %c0_30 = arith.constant 0 : index
    %116 = vector.load %arg7[%c0_28, %c0_29, %c0_30] : memref<1x128x128xbf16, #tpu.memory_space<vmem>>, vector<1x128x128xbf16>
    %117 = vector.shape_cast %116 : vector<1x128x128xbf16> to vector<128x128xbf16>
    %cst_31 = arith.constant dense<0.000000e+00> : vector<32x128xf32>
    %118 = tpu.matmul %115, %117, %cst_31 {dimension_numbers = #tpu.dot_dimension_numbers<[1], [0], [0], [1], [0, 0, 1, 1], [], []>} : vector<32x128xbf16>, vector<128x128xbf16>, vector<32x128xf32> -> vector<32x128xf32>
    %c0_32 = arith.constant 0 : index
    %c0_33 = arith.constant 0 : index
    %c0_34 = arith.constant 0 : index
    %119 = vector.load %arg8[%c0_32, %c0_33, %c0_34] : memref<1x1x128xf32, #tpu.memory_space<vmem>>, vector<1x1x128xf32>
    %120 = vector.shape_cast %119 : vector<1x1x128xf32> to vector<1x128xf32>
    %121 = vector.broadcast %120 : vector<1x128xf32> to vector<32x128xf32>
    %122 = arith.addf %118, %121 : vector<32x128xf32>
    %123 = arith.addf %122, %3 : vector<32x128xf32>
    %c0_35 = arith.constant 0 : index
    %c0_36 = arith.constant 0 : index
    %c0_37 = arith.constant 0 : index
    %124 = vector.load %arg9[%c0_35, %c0_36, %c0_37] : memref<1x1x128xf32, #tpu.memory_space<vmem>>, vector<1x1x128xf32>
    %125 = vector.shape_cast %124 : vector<1x1x128xf32> to vector<1x128xf32>
    %c0_38 = arith.constant 0 : index
    %c0_39 = arith.constant 0 : index
    %c0_40 = arith.constant 0 : index
    %126 = vector.load %arg10[%c0_38, %c0_39, %c0_40] : memref<1x1x128xf32, #tpu.memory_space<vmem>>, vector<1x1x128xf32>
    %127 = vector.shape_cast %126 : vector<1x1x128xf32> to vector<1x128xf32>
    %cst_41 = arith.constant dense<0.000000e+00> : vector<32xf32>
    %128 = vector.multi_reduction <add>, %123, %cst_41 [1] : vector<32x128xf32> to vector<32xf32>
    %129 = vector.shape_cast %128 : vector<32xf32> to vector<32x1xf32>
    %cst_42 = arith.constant 1.280000e+02 : f32
    %130 = vector.broadcast %cst_42 : f32 to vector<32x1xf32>
    %131 = arith.divf %129, %130 : vector<32x1xf32>
    %132 = vector.broadcast %131 : vector<32x1xf32> to vector<32x128xf32>
    %133 = arith.subf %123, %132 : vector<32x128xf32>
    %134 = arith.mulf %133, %133 : vector<32x128xf32>
    %cst_43 = arith.constant dense<0.000000e+00> : vector<32xf32>
    %135 = vector.multi_reduction <add>, %134, %cst_43 [1] : vector<32x128xf32> to vector<32xf32>
    %136 = vector.shape_cast %135 : vector<32xf32> to vector<32x1xf32>
    %cst_44 = arith.constant 1.280000e+02 : f32
    %137 = vector.broadcast %cst_44 : f32 to vector<32x1xf32>
    %138 = arith.divf %136, %137 : vector<32x1xf32>
    %139 = vector.broadcast %131 : vector<32x1xf32> to vector<32x128xf32>
    %140 = arith.subf %123, %139 : vector<32x128xf32>
    %cst_45 = arith.constant 9.99999996E-13 : f32
    %141 = vector.broadcast %cst_45 : f32 to vector<32x1xf32>
    %142 = arith.addf %138, %141 : vector<32x1xf32>
    %143 = math.rsqrt %142 : vector<32x1xf32>
    %144 = vector.broadcast %143 : vector<32x1xf32> to vector<32x128xf32>
    %145 = arith.mulf %140, %144 : vector<32x128xf32>
    %146 = vector.broadcast %125 : vector<1x128xf32> to vector<32x128xf32>
    %147 = arith.mulf %145, %146 : vector<32x128xf32>
    %148 = vector.broadcast %127 : vector<1x128xf32> to vector<32x128xf32>
    %149 = arith.addf %147, %148 : vector<32x128xf32>
    %150 = arith.truncf %149 : vector<32x128xf32> to vector<32x128xbf16>
    %c0_46 = arith.constant 0 : index
    %c0_47 = arith.constant 0 : index
    %c0_48 = arith.constant 0 : index
    %151 = vector.load %arg11[%c0_46, %c0_47, %c0_48] : memref<1x128x256xbf16, #tpu.memory_space<vmem>>, vector<1x128x256xbf16>
    %152 = vector.shape_cast %151 : vector<1x128x256xbf16> to vector<128x256xbf16>
    %cst_49 = arith.constant dense<0.000000e+00> : vector<32x256xf32>
    %153 = tpu.matmul %150, %152, %cst_49 {dimension_numbers = #tpu.dot_dimension_numbers<[1], [0], [0], [1], [0, 0, 1, 1], [], []>} : vector<32x128xbf16>, vector<128x256xbf16>, vector<32x256xf32> -> vector<32x256xf32>
    %c0_50 = arith.constant 0 : index
    %c0_51 = arith.constant 0 : index
    %c0_52 = arith.constant 0 : index
    %154 = vector.load %arg12[%c0_50, %c0_51, %c0_52] : memref<1x1x256xf32, #tpu.memory_space<vmem>>, vector<1x1x256xf32>
    %155 = vector.shape_cast %154 : vector<1x1x256xf32> to vector<1x256xf32>
    %156 = vector.broadcast %155 : vector<1x256xf32> to vector<32x256xf32>
    %157 = arith.addf %153, %156 : vector<32x256xf32>
    %158 = arith.mulf %157, %157 : vector<32x256xf32>
    %159 = arith.mulf %157, %158 : vector<32x256xf32>
    %cst_53 = arith.constant 4.471500e-02 : f32
    %160 = vector.broadcast %cst_53 : f32 to vector<32x256xf32>
    %161 = arith.mulf %160, %159 : vector<32x256xf32>
    %162 = arith.addf %157, %161 : vector<32x256xf32>
    %cst_54 = arith.constant 0.797884583 : f32
    %163 = vector.broadcast %cst_54 : f32 to vector<32x256xf32>
    %164 = arith.mulf %163, %162 : vector<32x256xf32>
    %165 = math.tanh %164 : vector<32x256xf32>
    %cst_55 = arith.constant 1.000000e+00 : f32
    %166 = vector.broadcast %cst_55 : f32 to vector<32x256xf32>
    %167 = arith.addf %166, %165 : vector<32x256xf32>
    %cst_56 = arith.constant 5.000000e-01 : f32
    %168 = vector.broadcast %cst_56 : f32 to vector<32x256xf32>
    %169 = arith.mulf %168, %167 : vector<32x256xf32>
    %170 = arith.mulf %157, %169 : vector<32x256xf32>
    %171 = arith.truncf %170 : vector<32x256xf32> to vector<32x256xbf16>
    %c0_57 = arith.constant 0 : index
    %c0_58 = arith.constant 0 : index
    %c0_59 = arith.constant 0 : index
    %172 = vector.load %arg13[%c0_57, %c0_58, %c0_59] : memref<1x256x128xbf16, #tpu.memory_space<vmem>>, vector<1x256x128xbf16>
    %173 = vector.shape_cast %172 : vector<1x256x128xbf16> to vector<256x128xbf16>
    %cst_60 = arith.constant dense<0.000000e+00> : vector<32x128xf32>
    %174 = tpu.matmul %171, %173, %cst_60 {dimension_numbers = #tpu.dot_dimension_numbers<[1], [0], [0], [1], [0, 0, 1, 1], [], []>} : vector<32x256xbf16>, vector<256x128xbf16>, vector<32x128xf32> -> vector<32x128xf32>
    %c0_61 = arith.constant 0 : index
    %c0_62 = arith.constant 0 : index
    %c0_63 = arith.constant 0 : index
    %175 = vector.load %arg14[%c0_61, %c0_62, %c0_63] : memref<1x1x128xf32, #tpu.memory_space<vmem>>, vector<1x1x128xf32>
    %176 = vector.shape_cast %175 : vector<1x1x128xf32> to vector<1x128xf32>
    %177 = vector.broadcast %176 : vector<1x128xf32> to vector<32x128xf32>
    %178 = arith.addf %174, %177 : vector<32x128xf32>
    %179 = arith.addf %178, %149 : vector<32x128xf32>
    %c0_64 = arith.constant 0 : index
    %c0_65 = arith.constant 0 : index
    %c0_66 = arith.constant 0 : index
    %180 = vector.load %arg15[%c0_64, %c0_65, %c0_66] : memref<1x1x128xf32, #tpu.memory_space<vmem>>, vector<1x1x128xf32>
    %181 = vector.shape_cast %180 : vector<1x1x128xf32> to vector<1x128xf32>
    %c0_67 = arith.constant 0 : index
    %c0_68 = arith.constant 0 : index
    %c0_69 = arith.constant 0 : index
    %182 = vector.load %arg16[%c0_67, %c0_68, %c0_69] : memref<1x1x128xf32, #tpu.memory_space<vmem>>, vector<1x1x128xf32>
    %183 = vector.shape_cast %182 : vector<1x1x128xf32> to vector<1x128xf32>
    %cst_70 = arith.constant dense<0.000000e+00> : vector<32xf32>
    %184 = vector.multi_reduction <add>, %179, %cst_70 [1] : vector<32x128xf32> to vector<32xf32>
    %185 = vector.shape_cast %184 : vector<32xf32> to vector<32x1xf32>
    %cst_71 = arith.constant 1.280000e+02 : f32
    %186 = vector.broadcast %cst_71 : f32 to vector<32x1xf32>
    %187 = arith.divf %185, %186 : vector<32x1xf32>
    %188 = vector.broadcast %187 : vector<32x1xf32> to vector<32x128xf32>
    %189 = arith.subf %179, %188 : vector<32x128xf32>
    %190 = arith.mulf %189, %189 : vector<32x128xf32>
    %cst_72 = arith.constant dense<0.000000e+00> : vector<32xf32>
    %191 = vector.multi_reduction <add>, %190, %cst_72 [1] : vector<32x128xf32> to vector<32xf32>
    %192 = vector.shape_cast %191 : vector<32xf32> to vector<32x1xf32>
    %cst_73 = arith.constant 1.280000e+02 : f32
    %193 = vector.broadcast %cst_73 : f32 to vector<32x1xf32>
    %194 = arith.divf %192, %193 : vector<32x1xf32>
    %195 = vector.broadcast %187 : vector<32x1xf32> to vector<32x128xf32>
    %196 = arith.subf %179, %195 : vector<32x128xf32>
    %cst_74 = arith.constant 9.99999996E-13 : f32
    %197 = vector.broadcast %cst_74 : f32 to vector<32x1xf32>
    %198 = arith.addf %194, %197 : vector<32x1xf32>
    %199 = math.rsqrt %198 : vector<32x1xf32>
    %200 = vector.broadcast %199 : vector<32x1xf32> to vector<32x128xf32>
    %201 = arith.mulf %196, %200 : vector<32x128xf32>
    %202 = vector.broadcast %181 : vector<1x128xf32> to vector<32x128xf32>
    %203 = arith.mulf %201, %202 : vector<32x128xf32>
    %204 = vector.broadcast %183 : vector<1x128xf32> to vector<32x128xf32>
    %205 = arith.addf %203, %204 : vector<32x128xf32>
    %c0_75 = arith.constant 0 : index
    %c0_76 = arith.constant 0 : index
    %206 = vector.load %arg22[%c0_75, %c0_76] : memref<32x128xf32, #tpu.memory_space<vmem>>, vector<32x128xf32>
    tpu.vector_store %arg22[%c0_75, %c0_76], %205 {strides = array<i32>} : memref<32x128xf32, #tpu.memory_space<vmem>>, vector<32x128xf32>,
    %c1_i32 = arith.constant 1 : i32
    %207 = arith.cmpi eq, %arg0, %c1_i32 : i32
    %208 = arith.extui %207 : i1 to i32
    %c0_i32_77 = arith.constant 0 : i32
    %209 = arith.cmpi ne, %208, %c0_i32_77 : i32
    scf.if %209 {
      %210 = vector.extract_strided_slice %205 {offsets = [0, 0], sizes = [1, 128], strides = [1, 1]} : vector<32x128xf32> to vector<1x128xf32>
      %211 = vector.extract_strided_slice %205 {offsets = [16, 0], sizes = [1, 128], strides = [1, 1]} : vector<32x128xf32> to vector<1x128xf32>
      %212 = tpu.concatenate %210, %211 in 0 : vector<1x128xf32>, vector<1x128xf32> -> vector<2x128xf32>
      %213 = arith.truncf %212 : vector<2x128xf32> to vector<2x128xbf16>
      %c0_78 = arith.constant 0 : index
      %c0_79 = arith.constant 0 : index
      %214 = vector.load %arg17[%c0_78, %c0_79] : memref<128x128xbf16, #tpu.memory_space<vmem>>, vector<128x128xbf16>
      %cst_80 = arith.constant dense<0.000000e+00> : vector<2x128xf32>
      %215 = tpu.matmul %213, %214, %cst_80 {dimension_numbers = #tpu.dot_dimension_numbers<[1], [0], [0], [1], [0, 0, 1, 1], [], []>} : vector<2x128xbf16>, vector<128x128xbf16>, vector<2x128xf32> -> vector<2x128xf32>
      %c0_81 = arith.constant 0 : index
      %c0_82 = arith.constant 0 : index
      %216 = vector.load %arg18[%c0_81, %c0_82] : memref<1x128xf32, #tpu.memory_space<vmem>>, vector<1x128xf32>
      %217 = vector.broadcast %216 : vector<1x128xf32> to vector<2x128xf32>
      %218 = arith.addf %215, %217 : vector<2x128xf32>
      %219 = math.tanh %218 : vector<2x128xf32>
      %220 = arith.truncf %219 : vector<2x128xf32> to vector<2x128xbf16>
      %c0_83 = arith.constant 0 : index
      %c0_84 = arith.constant 0 : index
      %221 = vector.load %arg19[%c0_83, %c0_84] : memref<128x128xbf16, #tpu.memory_space<vmem>>, vector<128x128xbf16>
      %cst_85 = arith.constant dense<0.000000e+00> : vector<2x128xf32>
      %222 = tpu.matmul %220, %221, %cst_85 {dimension_numbers = #tpu.dot_dimension_numbers<[1], [0], [0], [1], [0, 0, 1, 1], [], []>} : vector<2x128xbf16>, vector<128x128xbf16>, vector<2x128xf32> -> vector<2x128xf32>
      %c0_86 = arith.constant 0 : index
      %c0_87 = arith.constant 0 : index
      %223 = vector.load %arg20[%c0_86, %c0_87] : memref<1x128xf32, #tpu.memory_space<vmem>>, vector<1x128xf32>
      %224 = vector.broadcast %223 : vector<1x128xf32> to vector<2x128xf32>
      %225 = arith.addf %222, %224 : vector<2x128xf32>
      %226 = tpu.iota {dimensions = array<i32: 1>} : vector<2x128xi32>
      %c4_i32 = arith.constant 4 : i32
      %227 = vector.broadcast %c4_i32 : i32 to vector<2x128xi32>
      %228 = arith.cmpi slt, %226, %227 : vector<2x128xi32>
      %cst_88 = arith.constant -1.000000e+30 : f32
      %229 = vector.broadcast %cst_88 : f32 to vector<2x128xf32>
      %230 = arith.select %228, %225, %229 : vector<2x128xi1>, vector<2x128xf32>
      %cst_89 = arith.constant dense<0xFF800000> : vector<2xf32>
      %231 = vector.multi_reduction <maximumf>, %230, %cst_89 [1] : vector<2x128xf32> to vector<2xf32>
      %232 = vector.shape_cast %231 : vector<2xf32> to vector<2x1xf32>
      %233 = vector.broadcast %232 : vector<2x1xf32> to vector<2x128xf32>
      %234 = arith.subf %230, %233 : vector<2x128xf32>
      %235 = math.exp %234 : vector<2x128xf32>
      %cst_90 = arith.constant dense<0.000000e+00> : vector<2xf32>
      %236 = vector.multi_reduction <add>, %235, %cst_90 [1] : vector<2x128xf32> to vector<2xf32>
      %237 = vector.shape_cast %236 : vector<2xf32> to vector<2x1xf32>
      %238 = tpu.reciprocal %237 : vector<2x1xf32> -> vector<2x1xf32>
      %239 = vector.broadcast %238 : vector<2x1xf32> to vector<2x128xf32>
      %240 = arith.mulf %235, %239 : vector<2x128xf32>
      %c0_91 = arith.constant 0 : index
      %c0_92 = arith.constant 0 : index
      %241 = vector.load %arg21[%c0_91, %c0_92] : memref<2x128xf32, #tpu.memory_space<vmem>>, vector<2x128xf32>
      tpu.vector_store %arg21[%c0_91, %c0_92], %240 {strides = array<i32>} : memref<2x128xf32, #tpu.memory_space<vmem>>, vector<2x128xf32>,
    } else {
    }
    return
  }
  func.func @transform_0(%arg0: i32) -> (i32, i32) {
    %c0_i32 = arith.constant 0 : i32
    %c0_i32_0 = arith.constant 0 : i32
    %c0_i32_1 = arith.constant 0 : i32
    return %c0_i32, %c0_i32_0 : i32, i32
  }
  func.func @transform_1(%arg0: i32) -> (i32, i32) {
    %c0_i32 = arith.constant 0 : i32
    %c0_i32_0 = arith.constant 0 : i32
    %c0_i32_1 = arith.constant 0 : i32
    return %c0_i32, %c0_i32_0 : i32, i32
  }
  func.func @transform_2(%arg0: i32) -> (i32, i32) {
    %c0_i32 = arith.constant 0 : i32
    %c0_i32_0 = arith.constant 0 : i32
    %c0_i32_1 = arith.constant 0 : i32
    return %c0_i32, %c0_i32_0 : i32, i32
  }
  func.func @transform_3(%arg0: i32) -> (i32, i32) {
    %c0_i32 = arith.constant 0 : i32
    %c0_i32_0 = arith.constant 0 : i32
    %c0_i32_1 = arith.constant 0 : i32
    return %c0_i32, %c0_i32_0 : i32, i32
  }
  func.func @transform_4(%arg0: i32) -> (i32, i32, i32) {
    %c0_i32 = arith.constant 0 : i32
    %c0_i32_0 = arith.constant 0 : i32
    %c0_i32_1 = arith.constant 0 : i32
    return %arg0, %c0_i32, %c0_i32_0 : i32, i32, i32
  }
  func.func @transform_5(%arg0: i32) -> (i32, i32, i32) {
    %c0_i32 = arith.constant 0 : i32
    %c0_i32_0 = arith.constant 0 : i32
    %c0_i32_1 = arith.constant 0 : i32
    return %arg0, %c0_i32, %c0_i32_0 : i32, i32, i32
  }
  func.func @transform_6(%arg0: i32) -> (i32, i32, i32) {
    %c0_i32 = arith.constant 0 : i32
    %c0_i32_0 = arith.constant 0 : i32
    %c0_i32_1 = arith.constant 0 : i32
    return %arg0, %c0_i32, %c0_i32_0 : i32, i32, i32
  }
  func.func @transform_7(%arg0: i32) -> (i32, i32, i32) {
    %c0_i32 = arith.constant 0 : i32
    %c0_i32_0 = arith.constant 0 : i32
    %c0_i32_1 = arith.constant 0 : i32
    return %arg0, %c0_i32, %c0_i32_0 : i32, i32, i32
  }
  func.func @transform_8(%arg0: i32) -> (i32, i32, i32) {
    %c0_i32 = arith.constant 0 : i32
    %c0_i32_0 = arith.constant 0 : i32
    %c0_i32_1 = arith.constant 0 : i32
    return %arg0, %c0_i32, %c0_i32_0 : i32, i32, i32
  }
  func.func @transform_9(%arg0: i32) -> (i32, i32, i32) {
    %c0_i32 = arith.constant 0 : i32
    %c0_i32_0 = arith.constant 0 : i32
    %c0_i32_1 = arith.constant 0 : i32
    return %arg0, %c0_i32, %c0_i32_0 : i32, i32, i32
  }
  func.func @transform_10(%arg0: i32) -> (i32, i32, i32) {
    %c0_i32 = arith.constant 0 : i32
    %c0_i32_0 = arith.constant 0 : i32
    %c0_i32_1 = arith.constant 0 : i32
    return %arg0, %c0_i32, %c0_i32_0 : i32, i32, i32
  }
  func.func @transform_11(%arg0: i32) -> (i32, i32, i32) {
    %c0_i32 = arith.constant 0 : i32
    %c0_i32_0 = arith.constant 0 : i32
    %c0_i32_1 = arith.constant 0 : i32
    return %arg0, %c0_i32, %c0_i32_0 : i32, i32, i32
  }
  func.func @transform_12(%arg0: i32) -> (i32, i32, i32) {
    %c0_i32 = arith.constant 0 : i32
    %c0_i32_0 = arith.constant 0 : i32
    %c0_i32_1 = arith.constant 0 : i32
    return %arg0, %c0_i32, %c0_i32_0 : i32, i32, i32
  }
  func.func @transform_13(%arg0: i32) -> (i32, i32, i32) {
    %c0_i32 = arith.constant 0 : i32
    %c0_i32_0 = arith.constant 0 : i32
    %c0_i32_1 = arith.constant 0 : i32
    return %arg0, %c0_i32, %c0_i32_0 : i32, i32, i32
  }
  func.func @transform_14(%arg0: i32) -> (i32, i32, i32) {
    %c0_i32 = arith.constant 0 : i32
    %c0_i32_0 = arith.constant 0 : i32
    %c0_i32_1 = arith.constant 0 : i32
    return %arg0, %c0_i32, %c0_i32_0 : i32, i32, i32
  }
  func.func @transform_15(%arg0: i32) -> (i32, i32, i32) {
    %c0_i32 = arith.constant 0 : i32
    %c0_i32_0 = arith.constant 0 : i32
    %c0_i32_1 = arith.constant 0 : i32
    return %arg0, %c0_i32, %c0_i32_0 : i32, i32, i32
  }
  func.func @transform_16(%arg0: i32) -> (i32, i32) {
    %c0_i32 = arith.constant 0 : i32
    %c0_i32_0 = arith.constant 0 : i32
    %c0_i32_1 = arith.constant 0 : i32
    return %c0_i32, %c0_i32_0 : i32, i32
  }
  func.func @transform_17(%arg0: i32) -> (i32, i32) {
    %c0_i32 = arith.constant 0 : i32
    %c0_i32_0 = arith.constant 0 : i32
    %c0_i32_1 = arith.constant 0 : i32
    return %c0_i32, %c0_i32_0 : i32, i32
  }
  func.func @transform_18(%arg0: i32) -> (i32, i32) {
    %c0_i32 = arith.constant 0 : i32
    %c0_i32_0 = arith.constant 0 : i32
    %c0_i32_1 = arith.constant 0 : i32
    return %c0_i32, %c0_i32_0 : i32, i32
  }
  func.func @transform_19(%arg0: i32) -> (i32, i32) {
    %c0_i32 = arith.constant 0 : i32
    %c0_i32_0 = arith.constant 0 : i32
    %c0_i32_1 = arith.constant 0 : i32
    return %c0_i32, %c0_i32_0 : i32, i32
  }
  func.func @transform_20(%arg0: i32) -> (i32, i32) {
    %c0_i32 = arith.constant 0 : i32
    %c0_i32_0 = arith.constant 0 : i32
    %c0_i32_1 = arith.constant 0 : i32
    return %c0_i32, %c0_i32_0 : i32, i32
  }
}

</mosaic_0001>

<bundles_post_ra>
// kernel: roberta_forward.1
= control target key start
LH: loop header
LB: loop body
LE: loop exit
PB: predicated region body
PF: predicated region fallthrough
CT: control target
= control target key end

     0   :  { %s5847_s0 = inlined_call_operand.vmem [shape: f32[32,128], index: 0, kind: input, shape index: {}]   ;;  %s5848_s1 = inlined_call_operand.vmem [shape: f32[2,16], index: 1, kind: input, shape index: {}]   ;;  %s5849_s2 = inlined_call_operand.vmem [shape: f32[1,128], index: 2, kind: input, shape index: {}]   ;;  %s5850_s3 = inlined_call_operand.vmem [shape: f32[1,128], index: 3, kind: input, shape index: {}]   ;;  %s5851_s4 = inlined_call_operand.vmem [shape: bf16[2,128,384], index: 4, kind: input, shape index: {}]   ;;  %s5852_s5 = inlined_call_operand.vmem [shape: f32[2,1,384], index: 5, kind: input, shape index: {}]   ;;  %s5853_s6 = inlined_call_operand.vmem [shape: bf16[2,128,128], index: 6, kind: input, shape index: {}]   ;;  %s5854_s7 = inlined_call_operand.vmem [shape: f32[2,1,128], index: 7, kind: input, shape index: {}]   ;;  %s5855_s8 = inlined_call_operand.vmem [shape: f32[2,1,128], index: 8, kind: input, shape index: {}]   ;;  %s5856_s9 = inlined_call_operand.vmem [shape: f32[2,1,128], index: 9, kind: input, shape index: {}]   ;;  %s5857_s10 = inlined_call_operand.vmem [shape: bf16[2,128,256], index: 10, kind: input, shape index: {}]   ;;  %s5858_s11 = inlined_call_operand.vmem [shape: f32[2,1,256], index: 11, kind: input, shape index: {}]   ;;  %s5859_s12 = inlined_call_operand.vmem [shape: bf16[2,256,128], index: 12, kind: input, shape index: {}]   ;;  %s5860_s13 = inlined_call_operand.vmem [shape: f32[2,1,128], index: 13, kind: input, shape index: {}]   ;;  %s5861_s14 = inlined_call_operand.vmem [shape: f32[2,1,128], index: 14, kind: input, shape index: {}]   ;;  %s5862_s15 = inlined_call_operand.vmem [shape: f32[2,1,128], index: 15, kind: input, shape index: {}]   ;;  %s5863_s16 = inlined_call_operand.hbm [shape: bf16[128,128], index: 16, kind: input, shape index: {}]   ;;  %s5864_s17 = inlined_call_operand.vmem [shape: f32[1,128], index: 17, kind: input, shape index: {}]   ;;  %s5865_s18 = inlined_call_operand.hbm [shape: bf16[128,128], index: 18, kind: input, shape index: {}]   ;;  %s5866_s19 = inlined_call_operand.vmem [shape: f32[1,128], index: 19, kind: input, shape index: {}]   ;;  %s5867_s20 = inlined_call_operand.hbm [shape: f32[2,128], index: 20, kind: output, shape index: {}]  }
   0x1   :  { %5874 = sst [smem:[#allocation13_spill]] %s5847_s0 }
   0x2   :  { %5875 = sst [smem:[#allocation14_spill]] %s5848_s1 }
   0x3   :  { %5876 = sst [smem:[#allocation15_spill]] %s5849_s2 }
   0x4   :  { %5877 = sst [smem:[#allocation16_spill]] %s5850_s3 }
   0x5   :  { %5878 = sst [smem:[#allocation17_spill]] %s5851_s4 }
   0x6   :  { %5879 = sst [smem:[#allocation18_spill]] %s5852_s5 }
   0x7   :  { %5880 = sst [smem:[#allocation19_spill]] %s5853_s6 }
   0x8   :  { %5881 = sst [smem:[#allocation20_spill]] %s5857_s10 }
   0x9   :  { %5882 = sst [smem:[#allocation21_spill]] %s5863_s16 }
   0xa   :  { %5883 = sst [smem:[#allocation22_spill]] %s5864_s17 }
   0xb   :  { %5884 = sst [smem:[#allocation23_spill]] %s5865_s18 }
   0xc   :  { %5885 = sst [smem:[#allocation24_spill]] %s5866_s19 }
   0xd   :  { %5886 = sst [smem:[#allocation25_spill]] %s5867_s20 }
   0xe   :  { %25 = vsyncpa [#allocation4], 0 }
   0xf   :  { %26 = vsyncpa [#allocation7], 0 }
  0x10   :  { %27 = vsyncpa [#allocation5], 0  ;;  %s5133_s1 = smov 0  }
  0x11 LB: > { %5887 = sst [smem:[#allocation12_spill]] %s5015_s1  ;;  %s5139_s22 = sadd.s32 4294967295, %s5015_s1   ;;  %s5015_s1 = sphi %s5133_s1, %s33_s1  }
  0x12   : > { %p4003_p0 = scmp.ge.s32.totalorder %s5015_s1, 1  ;;  %p539_p1 = scmp.lt.s32.totalorder %s5015_s1, 3 }
  0x13   : > { %s5017_s23 = smov [#allocation3]   ;;  %p5870_p4 = scmp.eq.s32.totalorder %s5139_s22, 0 }
  0x14   : > { %s563_s24 = sshll.u32 %s5017_s23, 4  ;;  %p5144_p3 = pnand %p4003_p0, %p539_p1  ;;  %s564_s24 = int_to_ptr.vmem [resolvable:$true] %s563_s24 }
  0x15   : > { %s5018_s25 = smov [#allocation6]   ;;  %s5890_s16 = sld [smem:[#allocation21_spill]] }
  0x16   : > { %s5888_s2 = scalar_select %p5144_p3, 1, 0 }
  0x17   : > { %p4583_p5 = pneg %p5144_p3  ;;  %s579_s3 = sshll.u32 %s5018_s25, 4  ;;  %s5157_s3 = int_to_ptr.vmem [resolvable:$true] %s579_s3 }
  0x19   : > { %p5153_p6 = pnand %p5870_p4, %p4583_p5 }
  0x1b   : > { %s4915_s4 = scalar_lea.hbm %s5890_s16, 1024  ;;  %p4917_p8 = pneg %p5153_p6 }
  0x1c   : > { %p4916_p7 = scmp.ne.s32.totalorder %s5890_s16, %s4915_s4  ;;  %p4922_p11 = scmp.lt.u32.totalorder %s4915_s4, %s5890_s16 }
  0x1e   : > { %p4918_p9 = pnand %p4917_p8, %p4916_p7 }
  0x20   : > { %p4919_p10 = pneg %p4918_p9 }
  0x22   : > { %p4924_p12 = pnand %p4922_p11, %p4919_p10 }
  0x24   : > { %4927 = shalt.err (!%p4924_p12)
}
  0x25   : > { %s4928_s23 = scalar_lea.vmem %s564_s24, 1024  ;;  %p4936_p5 = scmp.lt.s32.totalorder %s564_s24, %s564_s24 }
  0x26   : > { %p4929_p13 = scmp.ne.s32.totalorder %s564_s24, %s4928_s23  ;;  %p4937_p2 = scmp.lt.s32.totalorder %s4928_s23, %s4928_s23 }
  0x28   : > { %p4931_p0 = pnand %p4929_p13, %p4917_p8  ;;  %p4938_p4 = por %p4937_p2, %p4936_p5 }
  0x2a   : > { %p4932_p1 = pneg %p4931_p0 }
  0x2c   : > { %p4939_p3 = pnand %p4938_p4, %p4932_p1 }
  0x2e   : > { %4942 = shalt.err (!%p4939_p3)
}
  0x2f   : > { %s5019_s25 = smov 64   ;;  %s5020_s27 = smov 4  }
  0x30   : > { %4586 = dma.hbm_to_vmem [thread:$0]  (!%p5153_p6), %s5890_s16, 1024, %s564_s24, [#allocation4], %s5019_s25, %s5019_s25, %s5020_s27  }
  0x31   : > { %s5891_s18 = sld [smem:[#allocation23_spill]] }
  0x37   : > { %s4943_s0 = scalar_lea.hbm %s5891_s18, 1024 }
  0x38   : > { %p4944_p7 = scmp.ne.s32.totalorder %s5891_s18, %s4943_s0  ;;  %p4950_p4 = scmp.lt.u32.totalorder %s4943_s0, %s5891_s18 }
  0x3a   : > { %p4946_p2 = pnand %p4944_p7, %p4917_p8 }
  0x3c   : > { %p4947_p3 = pneg %p4946_p2 }
  0x3e   : > { %p4952_p9 = pnand %p4950_p4, %p4947_p3 }
  0x40   : > { %4955 = shalt.err (!%p4952_p9)
}
  0x41   : > { %s4956_s24 = scalar_lea.vmem %s5157_s3, 1024  ;;  %p4964_p13 = scmp.lt.s32.totalorder %s5157_s3, %s5157_s3 }
  0x42   : > { %p4957_p10 = scmp.ne.s32.totalorder %s5157_s3, %s4956_s24  ;;  %p4965_p0 = scmp.lt.s32.totalorder %s4956_s24, %s4956_s24 }
  0x44   : > { %p4959_p11 = pnand %p4957_p10, %p4917_p8  ;;  %p4966_p1 = por %p4965_p0, %p4964_p13 }
  0x46   : > { %p4960_p12 = pneg %p4959_p11 }
  0x48   : > { %p4967_p5 = pnand %p4966_p1, %p4960_p12 }
  0x4a   : > { %4970 = shalt.err (!%p4967_p5)
}
  0x4b   : > { %4589 = dma.hbm_to_vmem [thread:$0]  (!%p5153_p6), %s5891_s18, 1024, %s5157_s3, [#allocation7], %s5019_s25, %s5019_s25, %s5020_s27  }
  0x4c   : > { %p5892_p7 = scmp.ne.s32.totalorder %s5888_s2, 0 }
  0x4d   : > { %p5893_p2 = scmp.eq.s32.totalorder (!%p5892_p7), %s5139_s22, 0 }
  0x4e   : > { %680 = sbr.rel (%p5892_p7) target bundleno = 3862 (0xf16), region = 100 }
  0x55   : > { %5002 = dma.done.wait (%p5893_p2), [#allocation4], 1024   ;;  %p5894_p8 = pmov %p5893_p2 }
  0x56   : > { %p5895_p3 = pmov %p5893_p2 }
  0x57   : > { %5004 = vsyncadd (%p5894_p8), [#allocation4], 4294966272 }
  0x58   : > { %5006 = dma.done.wait (%p5895_p3), [#allocation7], 1024   ;;  %p5896_p4 = pmov %p5893_p2 }
  0x59   : > { %p778_p9 = scmp.lt.s32.totalorder %s5139_s22, 1  ;;  %s5897_s6 = sld [smem:[#allocation19_spill]] }
  0x5a   : > { %5008 = vsyncadd (%p5896_p4), [#allocation7], 4294966272  ;;  %s5898_s0 = sld [smem:[#allocation17_spill]]  ;;  %s5899_s5 = sld [smem:[#allocation18_spill]] }
  0x5b   : > { %s5218_s26 = scalar_select %p778_p9, %s5139_s22, 1 }
  0x5c   : > { %s5900_s10 = sld [smem:[#allocation20_spill]]  ;;  %p5901_p6 = scmp.ne.s32.totalorder %s5139_s22, 0 }
  0x5d   : > { %s4569_s2 = smul.u32 192, %s5218_s26  ;;  %s4164_s3 = sshll.u32 %s5218_s26, 6 }
  0x5e   : > { %s4570_s25 = smul.u32 3, %s5218_s26  ;;  %s4165_s29 = sshll.u32 %s5218_s26, 7 }
  0x5f   : > { %s5226_s4 = scalar_lea.vmem %s5897_s6, %s4164_s3  ;;  %s4015_s23 = sshll.u32 %s5218_s26, 1 }
  0x60   : > { %s5231_s21 = scalar_lea.vmem %s5898_s0, %s4569_s2  ;;  %s5240_s18 = scalar_lea.vmem %s5899_s5, %s4570_s25 }
  0x61   : > { %s5260_s16 = scalar_lea.vmem %s5858_s11, %s4015_s23  ;;  %s5265_s17 = scalar_lea.vmem %s5859_s12, %s4165_s29 }
  0x62   : > { %s5254_s0 = scalar_lea.vmem %s5900_s10, %s4165_s29  ;;  %s817_s28 = scalar_lea.vmem %s5860_s13, %s5218_s26 }
  0x63   : > { %s820_s2 = scalar_lea.vmem %s5861_s14, %s5218_s26  ;;  %s823_s10 = scalar_lea.vmem %s5862_s15, %s5218_s26 }
  0x64   : > { %828 = sbr.rel (%p5901_p6) target bundleno = 427 (0x1ab), region = 112  ;;  %s5902_s24 = sld [smem:[#allocation13_spill]] (!%p5901_p6) }
  0x65   : > { %s5903_s30 = sld [smem:[#allocation15_spill]] (!%p5901_p6)  ;;  %s5904_s29 = sld [smem:[#allocation16_spill]] (!%p5901_p6) }
  0x6a   : > { %v829_v0 = vld [vmem:[%s5902_s24] sm:$0xff] (!%p5901_p6)  ;;  %v831_v1 = vld [vmem:[%s5902_s24 + $0x10] sm:$0xff] (!%p5901_p6)  ;;  %v830_v2 = vld [vmem:[%s5902_s24 + $0x8] sm:$0xff] (!%p5901_p6) }
  0x6b   : > { %835 = vadd.xlane.f32.xlu0 %v829_v0  ;;  %839 = vadd.xlane.f32.xlu1 %v831_v1  ;;  %v832_v3 = vld [vmem:[%s5902_s24 + $0x18] sm:$0xff]  ;;  %v4019_v33 = vld [vmem:[%s5903_s30] ss:$0 sm:$0xff] }
  0x6c   : > { %v4020_v35 = vld [vmem:[%s5904_s29] ss:$0 sm:$0xff] }
  0x6f   : > { %837 = vadd.xlane.f32.xlu0 %v830_v2  ;;  %841 = vadd.xlane.f32.xlu1 %v832_v3 }
  0xf8   : > { %v836_v4 = vpop.xlane.xlu0 %835  ;;  %v840_v5 = vpop.xlane.xlu1 %839 }
  0xf9   : > { %v844_v6 = vmul.f32 0.0078125, %v836_v4  ;;  %v846_v7 = vmul.f32 0.0078125, %v840_v5 }
  0xfb   : > { %v848_v8 = vsub.f32 %v829_v0, %v844_v6  ;;  %v850_v9 = vsub.f32 %v831_v1, %v846_v7 }
  0xfc   : > { %v838_v10 = vpop.xlane.xlu0 %837  ;;  %v842_v11 = vpop.xlane.xlu1 %841 }
  0xfd   : > { %v845_v12 = vmul.f32 0.0078125, %v838_v10  ;;  %v852_v13 = vmul.f32 %v848_v8, %v848_v8  ;;  %v847_v14 = vmul.f32 0.0078125, %v842_v11  ;;  %v854_v17 = vmul.f32 %v850_v9, %v850_v9 }
  0xff   : > { %v849_v15 = vsub.f32 %v830_v2, %v845_v12  ;;  %856 = vadd.xlane.f32.xlu0 %v852_v13  ;;  %v851_v16 = vsub.f32 %v832_v3, %v847_v14 }
 0x101   : > { %v853_v18 = vmul.f32 %v849_v15, %v849_v15  ;;  %v855_v19 = vmul.f32 %v851_v16, %v851_v16 }
 0x103   : > { %860 = vadd.xlane.f32.xlu0 %v854_v17  ;;  %858 = vadd.xlane.f32.xlu1 %v853_v18 }
 0x107   : > { %862 = vadd.xlane.f32.xlu1 %v855_v19 }
 0x18c   : > { %v857_v20 = vpop.xlane.xlu0 %856 }
 0x18d   : > { %v864_v21 = vmul.f32 0.0078125, %v857_v20 }
 0x18f   : > { %v868_v22 = vadd.f32 1e-12, %v864_v21 }
 0x190   : > { %v859_v23 = vpop.xlane.xlu1 %858  ;;  %v861_v24 = vpop.xlane.xlu0 %860 }
 0x191   : > { %4615 = vrsqrt.f32 %v868_v22  ;;  %v865_v25 = vmul.f32 0.0078125, %v859_v23  ;;  %v866_v26 = vmul.f32 0.0078125, %v861_v24 }
 0x193   : > { %v869_v27 = vadd.f32 1e-12, %v865_v25  ;;  %v870_v28 = vadd.f32 1e-12, %v866_v26 }
 0x194   : > { %v863_v29 = vpop.xlane.xlu1 %862 }
 0x195   : > { %4617 = vrsqrt.f32 %v869_v27  ;;  %v867_v30 = vmul.f32 0.0078125, %v863_v29 }
 0x196   : > { %4619 = vrsqrt.f32 %v870_v28 }
 0x197   : > { %v871_v31 = vadd.f32 1e-12, %v867_v30 }
 0x199   : > { %4621 = vrsqrt.f32 %v871_v31 }
 0x19b   : > { %v4616_v32 = vpop.eup %4615 }
 0x19c   : > { %v876_v34 = vmul.f32 %v4616_v32, %v848_v8 }
 0x19e   : > { %v886_v36 = vmul.f32 %v4019_v33, %v876_v34 }
 0x19f   : > { %v4618_v37 = vpop.eup %4617 }
 0x1a0   : > { %v4620_v38 = vpop.eup %4619  ;;  %v896_v39 = vadd.f32 %v4020_v35, %v886_v36  ;;  %v877_v40 = vmul.f32 %v4618_v37, %v849_v15 }
 0x1a1   : > { %v878_v41 = vmul.f32 %v4620_v38, %v850_v9 }
 0x1a2   : > { %900 = vst [vmem:[#allocation2] sm:$0xff] %v896_v39  ;;  %v887_v42 = vmul.f32 %v4019_v33, %v877_v40 }
 0x1a3   : > { %v4622_v43 = vpop.eup %4621  ;;  %v888_v44 = vmul.f32 %v4019_v33, %v878_v41 }
 0x1a4   : > { %v897_v45 = vadd.f32 %v4020_v35, %v887_v42  ;;  %v879_v46 = vmul.f32 %v4622_v43, %v851_v16 }
 0x1a5   : > { %v898_v47 = vadd.f32 %v4020_v35, %v888_v44 }
 0x1a6   : > { %901 = vst [vmem:[#allocation2 + $0x8] sm:$0xff] %v897_v45  ;;  %v889_v48 = vmul.f32 %v4019_v33, %v879_v46 }
 0x1a7   : > { %902 = vst [vmem:[#allocation2 + $0x10] sm:$0xff] %v898_v47 }
 0x1a8   : > { %v899_v49 = vadd.f32 %v4020_v35, %v889_v48 }
 0x1aa   : > { %903 = vst [vmem:[#allocation2 + $0x18] sm:$0xff] %v899_v49 }
 0x1ab PF: > { %v4713_v50 = vld [vmem:[%s5231_s21 + $0x4] ss:$12 sps:$4 sm:$0xff]   ;;  %v4715_v51 = vld [vmem:[%s5231_s21] ss:$12 sps:$4 sm:$0xff]   ;;  %v5021_v52 = vmov 0   ;;  %v944_v17 = vlaneseq  ;;  %vm1287_vm0 = vcmask 261120   ;;  %s5908_s30 = scalar_lea.vmem %s5854_s7, %s5218_s26  ;;  %s5909_s23 = scalar_lea.vmem %s5855_s8, %s5218_s26 }
 0x1ac   : > { %1119 = vmatprep.mubr.bf16.mxu0 %v5021_v52  ;;  %1087 = vmatprep.subr.bf16.mxu0 %v4713_v50  ;;  %v4716_v53 = vld [vmem:[%s5231_s21 + $0x1c] ss:$12 sps:$4 sm:$0xff]   ;;  %v4718_v54 = vld [vmem:[%s5231_s21 + $0x18] ss:$12 sps:$4 sm:$0xff]   ;;  %v4719_v55 = vld [vmem:[%s5231_s21 + $0x34] ss:$12 sps:$4 sm:$0xff]  }
 0x1ad   : > { %1088 = vmatpush1.bf16.msra.mxu0 %v4715_v51  ;;  %v4721_v56 = vld [vmem:[%s5231_s21 + $0x30] ss:$12 sps:$4 sm:$0xff]   ;;  %v4722_v57 = vld [vmem:[%s5231_s21 + $0x4c] ss:$12 sps:$4 sm:$0xff]   ;;  %v904_v58 = vld [vmem:[#allocation2] sm:$0xff]  ;;  %v5326_v18 = vshrl.u32 %v944_v17, 7 }
 0x1ae   : > { %1089 = vmatprep.subr.bf16.mxu0 %v4716_v53  ;;  %v4724_v59 = vld [vmem:[%s5231_s21 + $0x48] ss:$12 sps:$4 sm:$0xff]   ;;  %v4725_v60 = vld [vmem:[%s5231_s21 + $0x64] ss:$12 sps:$4 sm:$0xff]   ;;  %v4738_v0 = vld [vmem:[%s5231_s21 + $0x20] ss:$12 sps:$4 sm:$0xff]  }
 0x1af   : > { %v905_v61 = vld [vmem:[#allocation2 + $0x8] sm:$0xff]  ;;  %v4739_v3 = vld [vmem:[%s5231_s21 + $0x38] ss:$12 sps:$4 sm:$0xff]   ;;  %v4731_v5 = vld [vmem:[%s5231_s21 + $0x94] ss:$12 sps:$4 sm:$0xff]   ;;  %v946_v19 = vsub.s32 0, %v5326_v18 }
 0x1b0   : > { %v908_v62 = vpack.c.bf16 %v905_v61, %v904_v58  ;;  %v4737_v63 = vld [vmem:[%s5231_s21 + $0x8] ss:$12 sps:$4 sm:$0xff]   ;;  %v4727_v1 = vld [vmem:[%s5231_s21 + $0x60] ss:$12 sps:$4 sm:$0xff]   ;;  %v4730_v4 = vld [vmem:[%s5231_s21 + $0x78] ss:$12 sps:$4 sm:$0xff]  }
 0x1b1   : > { %1090 = vmatpush1.bf16.msra.mxu0 %v4718_v54  ;;  %4297 = vmatprep.subr.bf16.mxu1 %v4737_v63  ;;  %v4728_v2 = vld [vmem:[%s5231_s21 + $0x7c] ss:$12 sps:$4 sm:$0xff]   ;;  %v4734_v8 = vld [vmem:[%s5231_s21 + $0xac] ss:$12 sps:$4 sm:$0xff]   ;;  %v906_v13 = vld [vmem:[#allocation2 + $0x10] sm:$0xff]  ;;  %v950_v21 = vsub.s32 1, %v5326_v18 }
 0x1b2   : > { %1091 = vmatprep.subr.bf16.mxu0 %v4719_v55  ;;  %4313 = vmatprep.mubr.bf16.mxu1 %v908_v62  ;;  %v4740_v6 = vld [vmem:[%s5231_s21 + $0x50] ss:$12 sps:$4 sm:$0xff]   ;;  %v4741_v9 = vld [vmem:[%s5231_s21 + $0x68] ss:$12 sps:$4 sm:$0xff]   ;;  %v4742_v11 = vld [vmem:[%s5231_s21 + $0x80] ss:$12 sps:$4 sm:$0xff]  }
 0x1b3   : > { %4298 = vmatpush3.bf16.msra.mxu1 %v4737_v63  ;;  %v4733_v7 = vld [vmem:[%s5231_s21 + $0x90] ss:$12 sps:$4 sm:$0xff]   ;;  %v4736_v10 = vld [vmem:[%s5231_s21 + $0xa8] ss:$12 sps:$4 sm:$0xff]   ;;  %v4743_v12 = vld [vmem:[%s5231_s21 + $0x98] ss:$12 sps:$4 sm:$0xff]  }
 0x1b4   : > { %4299 = vmatprep.subr.bf16.mxu1 %v4738_v0  ;;  %v907_v14 = vld [vmem:[#allocation2 + $0x18] sm:$0xff]  ;;  %v942_v20 = vld [vmem:[%s5240_s18] sm:$0x7]  ;;  %vm5339_vm1 = vmpackc.low %vm1287_vm0, %vm1287_vm0  ;;  %s5023_s18 = smov 64   ;;  %s5024_s25 = smov 32   ;;  %v954_v45 = vsub.s32 2, %v5326_v18 }
 0x1b5   : > { %1092 = vmatpush1.bf16.msra.mxu0 %v4721_v56  ;;  %v4744_v15 = vld [vmem:[%s5231_s21 + $0xb0] ss:$12 sps:$4 sm:$0xff]   ;;  %v909_v16 = vpack.c.bf16 %v907_v14, %v906_v13  ;;  %v947_v22 = vrot.slane %v942_v20, %v946_v19  ;;  %v951_v24 = vrot.slane %v942_v20, %v950_v21  ;;  %s5022_s21 = smov 96   ;;  %s5907_s27 = sld [smem:[#allocation14_spill]]  ;;  %vm1992_vm2 = vcmask 130048  }
 0x1b6   : > { %1093 = vmatprep.subr.bf16.mxu0 %v4722_v57  ;;  %v955_v48 = vrot.slane %v942_v20, %v954_v45  ;;  %vm2843_vm3 = vcmask 523264   ;;  %vm2846_vm4 = vcmask 785408   ;;  %p4141_p10 = scmp.ne.s32.totalorder %s5139_s22, 1 }
 0x1b7   : > { %4300 = vmatpush3.bf16.msra.mxu1 %v4738_v0  ;;  %vm5026_vm5 = vmmov (!%p4141_p10), 0   ;;  %vm3576_vm6 = vcmask (!%p4141_p10), 1040384   ;;  %vm3807_vm8 = vcmask (!%p4141_p10), 1041408  }
 0x1b8   : > { %4301 = vmatprep.subr.bf16.mxu1 %v4739_v3 }
 0x1b9   : > { %1094 = vmatpush1.bf16.msra.mxu0 %v4724_v59 }
 0x1ba   : > { %1095 = vmatprep.subr.bf16.mxu0 %v4725_v60 }
 0x1bb   : > { %4302 = vmatpush3.bf16.msra.mxu1 %v4739_v3  ;;  %v4077_v32 = vld [vmem:[%s5907_s27] ss:$0 sm:$0xff] }
 0x1bc   : > { %4303 = vmatprep.subr.bf16.mxu1 %v4740_v6 }
 0x1bd   : > { %1096 = vmatpush1.bf16.msra.mxu0 %v4727_v1 }
 0x1be   : > { %1097 = vmatprep.subr.bf16.mxu0 %v4728_v2 }
 0x1bf   : > { %4304 = vmatpush3.bf16.msra.mxu1 %v4740_v6 }
 0x1c0   : > { %4305 = vmatprep.subr.bf16.mxu1 %v4741_v9 }
 0x1c1   : > { %1098 = vmatpush1.bf16.msra.mxu0 %v4730_v4 }
 0x1c2   : > { %1099 = vmatprep.subr.bf16.mxu0 %v4731_v5 }
 0x1c3   : > { %4306 = vmatpush3.bf16.msra.mxu1 %v4741_v9 }
 0x1c4   : > { %4307 = vmatprep.subr.bf16.mxu1 %v4742_v11 }
 0x1c5   : > { %1100 = vmatpush1.bf16.msra.mxu0 %v4733_v7 }
 0x1c6   : > { %1101 = vmatprep.subr.bf16.mxu0 %v4734_v8 }
 0x1c7   : > { %4308 = vmatpush3.bf16.msra.mxu1 %v4742_v11 }
 0x1c8   : > { %4309 = vmatprep.subr.bf16.mxu1 %v4743_v12 }
 0x1c9   : > { %1102 = vmatpush1.bf16.msra.mxu0 %v4736_v10 }
 0x1cb   : > { %4310 = vmatpush3.bf16.msra.mxu1 %v4743_v12 }
 0x1cc   : > { %1120 = vmatmul.mubr.bf16.vlgmr.msra.gmra.mrb[0].mxu0 %v908_v62  ;;  %4311 = vmatprep.subr.bf16.mxu1 %v4744_v15 }
 0x1cd   : > { %1129 = vmatprep.mubr.bf16.mxu0 %v5021_v52 }
 0x1cf   : > { %4312 = vmatpush3.bf16.msra.mxu1 %v4744_v15 }
 0x1d2   : > { %4314 = vmatmul.mubr.bf16.vlgmr.msra.gmra.mrb[0].mxu1 %v909_v16 }
 0x1d4   : > { %1130 = vmatmul.mubr.bf16.gmra.mrb[4].mxu0 %v909_v16 }
 0x29f   : > { %v1121_v23 = vpop.f32.mrb[0].mxu0 }
 0x2a0   : > { %v1122_v25 = vadd.f32 %v1121_v23, %v947_v22  ;;  %v1123_v26 = vpop.f32.mrb[1].mxu0 }
 0x2a1   : > { %v1125_v27 = vpop.f32.mrb[2].mxu0  ;;  %v1124_v29 = vadd.f32 %v1123_v26, %v951_v24 }
 0x2a2   : > { %v1127_v28 = vpop.f32.mrb[3].mxu0  ;;  %1191 = vrot.lane.b32.xlu1 %v1122_v25, %s5022_s21  ;;  %4321 = vmatprep.mubr.msk.f32.mxu1 %vm1287_vm0, %v1122_v25  ;;  %v1126_v31 = vadd.f32 %v1125_v27, %v947_v22 }
 0x2a3   : > { %v1128_v30 = vadd.f32 %v1127_v28, %v951_v24 }
 0x2a5   : > { %v4623_v33 = vpack.i.bf16 %v1128_v30, %v1124_v29  ;;  %v4489_v34 = vpack.c.bf16 %v1128_v30, %v1124_v29  ;;  %v4315_v46 = vpop.f32.mrb[0].mxu1 }
 0x2a6   : > { %1193 = vrot.lane.b32.xlu1 %v1126_v31, %s5022_s21  ;;  %v1174_v47 = vpop.f32.mrb[1].mxu1  ;;  %v5378_v51 = vadd.f32 %v4315_v46, %v955_v48 }
 0x2a7   : > { %v1131_v35 = vpop.f32.mrb[4].mxu0  ;;  %4624 = vrot.lane.b32.xlu0 %v4623_v33, %s5022_s21  ;;  %4491 = vmatprep.subr.msk.bf16.mxu1 %vm5339_vm1, %v4489_v34  ;;  %v4316_v49 = vpop.f32.mrb[2].mxu1  ;;  %v5380_v53 = vadd.f32 %v1174_v47, %v955_v48 }
 0x2a8   : > { %v1133_v36 = vpop.f32.mrb[5].mxu0  ;;  %4494 = vmatpush3.bf16.xpose.msk.msra.mxu1 %vm5339_vm1, %v4489_v34  ;;  %v5365_v44 = vadd.f32 %v1131_v35, %v947_v22  ;;  %v1177_v50 = vpop.f32.mrb[3].mxu1  ;;  %v5382_v54 = vadd.f32 %v4316_v49, %v955_v48 }
 0x2a9   : > { %v1134_v37 = vadd.f32 %v1133_v36, %v951_v24  ;;  %v1135_v38 = vpop.f32.mrb[6].mxu0  ;;  %v5384_v55 = vadd.f32 %v1177_v50, %v955_v48 }
 0x2aa   : > { %v1137_v39 = vpop.f32.mrb[7].mxu0  ;;  %1195 = vrot.lane.b32.xlu1 %v1122_v25, %s5023_s18  ;;  %v5360_v43 = vadd.f32 %v1135_v38, %v947_v22  ;;  %v5442_v35 = vpack.i.bf16 %v5382_v54, %v5378_v51  ;;  %v5446_v36 = vpack.c.bf16 %v5382_v54, %v5378_v51 }
 0x2ab   : > { %v1138_v40 = vadd.f32 %v1137_v39, %v951_v24  ;;  %4629 = vrot.lane.b32.xlu0 %v4623_v33, %s5023_s18  ;;  %v5388_v56 = vpack.i.bf16 %v5384_v55, %v5380_v53  ;;  %v4537_v34 = vpack.c.bf16 %v5384_v55, %v5380_v53 }
 0x2ad   : > { %v4638_v41 = vpack.i.bf16 %v1138_v40, %v1134_v37  ;;  %v5351_v42 = vpack.c.bf16 %v1138_v40, %v1134_v37 }
 0x2af   : > { %4634 = vrot.lane.b32.xlu0 %v4623_v33, %s5024_s25  ;;  %4639 = vrot.lane.b32.xlu1 %v4638_v41, %s5022_s21 }
 0x2b0   : > { %4322 = vmatmul.mubr.msk.f32.vlgmr.msra.gmra.mrb[4].mxu1 %vm1287_vm0, %v1126_v31 }
 0x2b3   : > { %1197 = vrot.lane.b32.xlu0 %v1126_v31, %s5023_s18  ;;  %1201 = vrot.lane.b32.xlu1 %v1126_v31, %s5024_s25 }
 0x2b7   : > { %1199 = vrot.lane.b32.xlu0 %v1122_v25, %s5024_s25  ;;  %4649 = vrot.lane.b32.xlu1 %v4638_v41, %s5024_s25 }
 0x2bb   : > { %4644 = vrot.lane.b32.xlu0 %v4638_v41, %s5023_s18  ;;  %1207 = vrot.lane.b32.xlu1 %v5360_v43, %s5022_s21 }
 0x2bf   : > { %1205 = vrot.lane.b32.xlu0 %v5365_v44, %s5022_s21  ;;  %1211 = vrot.lane.b32.xlu1 %v5360_v43, %s5023_s18 }
 0x2c3   : > { %1209 = vrot.lane.b32.xlu0 %v5365_v44, %s5023_s18  ;;  %1215 = vrot.lane.b32.xlu1 %v5360_v43, %s5024_s25 }
 0x2c7   : > { %1213 = vrot.lane.b32.xlu0 %v5365_v44, %s5024_s25  ;;  %4654 = vrot.lane.b32.xlu1 %v5388_v56, %s5022_s21 }
 0x314   : > { %v1192_v57 = vpop.permute.xlu1 %1191 }
 0x315   : > { %4328 = vmatprep.mubr.msk.f32.mxu1 %vm1287_vm0, %v1192_v57 }
 0x318   : > { %v1194_v58 = vpop.permute.xlu1 %1193 }
 0x319   : > { %v4625_v59 = vpop.permute.xlu0 %4624 }
 0x31a   : > { %v4627_v60 = vunpack.i.h.bf16 %v4625_v59  ;;  %v4626_v61 = vunpack.i.l.bf16 %v4625_v59 }
 0x31c   : > { %v4495_v62 = vpack.c.bf16 %v4627_v60, %v4626_v61  ;;  %v1196_v63 = vpop.permute.xlu1 %1195 }
 0x31d   : > { %v4630_v0 = vpop.permute.xlu0 %4629 }
 0x31e   : > { %v4632_v1 = vunpack.i.h.bf16 %v4630_v0  ;;  %v4631_v2 = vunpack.i.l.bf16 %v4630_v0  ;;  %4497 = vmatprep.subr.msk.bf16.mxu1 %vm5339_vm1, %v4495_v62 }
 0x31f   : > { %4500 = vmatpush3.bf16.xpose.msk.msra.mxu1 %vm5339_vm1, %v4495_v62 }
 0x320   : > { %v4501_v3 = vpack.c.bf16 %v4632_v1, %v4631_v2 }
 0x321   : > { %v4635_v4 = vpop.permute.xlu0 %4634  ;;  %v4640_v5 = vpop.permute.xlu1 %4639 }
 0x322   : > { %v4637_v6 = vunpack.i.h.bf16 %v4635_v4  ;;  %v4636_v7 = vunpack.i.l.bf16 %v4635_v4  ;;  %v4642_v8 = vunpack.i.h.bf16 %v4640_v5  ;;  %v4641_v9 = vunpack.i.l.bf16 %v4640_v5  ;;  %4503 = vmatprep.subr.msk.bf16.mxu1 %vm5339_vm1, %v4501_v3 }
 0x324   : > { %v4519_v10 = vpack.c.bf16 %v4642_v8, %v4641_v9  ;;  %v4507_v13 = vpack.c.bf16 %v4637_v6, %v4636_v7 }
 0x325   : > { %v1198_v11 = vpop.permute.xlu0 %1197  ;;  %v1202_v12 = vpop.permute.xlu1 %1201 }
 0x326   : > { %4329 = vmatmul.mubr.msk.f32.vlgmr.msra.gmra.mrb[6].mxu1 %vm1287_vm0, %v1194_v58  ;;  %4521 = vmatprep.subr.msk.bf16.mxu0 %vm5339_vm1, %v4519_v10 }
 0x327   : > { %4506 = vmatpush3.bf16.xpose.msk.msra.mxu1 %vm5339_vm1, %v4501_v3  ;;  %4335 = vmatprep.mubr.msk.f32.mxu1 %vm1287_vm0, %v1196_v63  ;;  %v4078_v3 = vld [vmem:[%s5907_s27 + $0x1] ss:$0 sm:$0xff] }
 0x328   : > { %4524 = vmatpush3.bf16.xpose.msk.msra.mxu0 %vm5339_vm1, %v4519_v10  ;;  %4509 = vmatprep.subr.msk.bf16.mxu1 %vm5339_vm1, %v4507_v13 }
 0x329   : > { %v1200_v14 = vpop.permute.xlu0 %1199  ;;  %v4650_v15 = vpop.permute.xlu1 %4649 }
 0x32a   : > { %v4652_v16 = vunpack.i.h.bf16 %v4650_v15  ;;  %v4651_v20 = vunpack.i.l.bf16 %v4650_v15 }
 0x32c   : > { %v4531_v22 = vpack.c.bf16 %v4652_v16, %v4651_v20 }
 0x32d   : > { %v4645_v23 = vpop.permute.xlu0 %4644  ;;  %v1208_v24 = vpop.permute.xlu1 %1207 }
 0x32e   : > { %4336 = vmatmul.mubr.msk.f32.vlgmr.msra.gmra.mrb[8].mxu1 %vm1287_vm0, %v1198_v11  ;;  %4533 = vmatprep.subr.msk.bf16.mxu0 %vm5339_vm1, %v4531_v22  ;;  %v4647_v26 = vunpack.i.h.bf16 %v4645_v23  ;;  %v4646_v27 = vunpack.i.l.bf16 %v4645_v23 }
 0x32f   : > { %4512 = vmatpush3.bf16.xpose.msk.msra.mxu1 %vm5339_vm1, %v4507_v13  ;;  %4342 = vmatprep.mubr.msk.f32.mxu1 %vm1287_vm0, %v1200_v14 }
 0x330   : > { %4515 = vmatprep.subr.msk.bf16.mxu1 %vm5339_vm1, %v5351_v42  ;;  %v4525_v30 = vpack.c.bf16 %v4647_v26, %v4646_v27 }
 0x331   : > { %v1206_v25 = vpop.permute.xlu0 %1205  ;;  %v1212_v28 = vpop.permute.xlu1 %1211 }
 0x332   : > { %4356 = vmatprep.mubr.msk.f32.mxu0 %vm1287_vm0, %v1206_v25 }
 0x333   : > { %4357 = vmatmul.mubr.msk.f32.vlgmr.msra.gmra.mrb[8].mxu0 %vm1287_vm0, %v1208_v24 }
 0x334   : > { %4536 = vmatpush3.bf16.xpose.msk.msra.mxu0 %vm5339_vm1, %v4531_v22 }
 0x335   : > { %v1210_v29 = vpop.permute.xlu0 %1209  ;;  %v1216_v33 = vpop.permute.xlu1 %1215 }
 0x336   : > { %4343 = vmatmul.mubr.msk.f32.vlgmr.msra.gmra.mrb[10].mxu1 %vm1287_vm0, %v1202_v12 }
 0x337   : > { %4518 = vmatpush3.bf16.xpose.msk.msra.mxu1 %vm5339_vm1, %v5351_v42  ;;  %4349 = vmatprep.mubr.msk.f32.mxu1 %vm1287_vm0, %v5365_v44 }
 0x338   : > { %4527 = vmatprep.subr.msk.bf16.mxu1 %vm5339_vm1, %v4525_v30 }
 0x339   : > { %v1214_v31 = vpop.permute.xlu0 %1213  ;;  %v4655_v45 = vpop.permute.xlu1 %4654 }
 0x33a   : > { %4370 = vmatprep.mubr.msk.f32.mxu0 %vm1287_vm0, %v1214_v31  ;;  %v4657_v46 = vunpack.i.h.bf16 %v4655_v45  ;;  %v4656_v47 = vunpack.i.l.bf16 %v4655_v45 }
 0x33b   : > { %4371 = vmatmul.mubr.msk.f32.vlgmr.msra.gmra.mrb[10].mxu0 %vm1287_vm0, %v1216_v33 }
 0x33c   : > { %v5459_v48 = vpack.c.bf16 %v4657_v46, %v4656_v47 }
 0x33e   : > { %4350 = vmatmul.mubr.msk.f32.vlgmr.msra.gmra.mrb[12].mxu1 %vm1287_vm0, %v5360_v43 }
 0x33f   : > { %4530 = vmatpush3.bf16.xpose.msk.msra.mxu1 %vm5339_vm1, %v4525_v30  ;;  %4363 = vmatprep.mubr.msk.f32.mxu1 %vm1287_vm0, %v1210_v29 }
 0x340   : > { %4538 = vmatprep.subr.bf16.mxu1 %v4537_v34 }
 0x346   : > { %4364 = vmatmul.mubr.msk.f32.vlgmr.msra.gmra.mrb[14].mxu1 %vm1287_vm0, %v1212_v28 }
 0x347   : > { %4540 = vmatpush3.bf16.msra.mxu1 %v4537_v34 }
 0x348   : > { %4542 = vmatprep.subr.bf16.mxu1 %v5459_v48 }
 0x383   : > { %v4323_v37 = vpop.f32.mrb[4].mxu1 }
 0x384   : > { %v1953_v38 = vmul.f32 0.17677669, %v4323_v37  ;;  %v1362_v39 = vpop.f32.mrb[5].mxu1 }
 0x385   : > { %v1952_v40 = vmul.f32 0.17677669, %v1362_v39 }
 0x386   : > { %v5451_v41 = vadd.f32 %v4077_v32, %v1953_v38 }
 0x387   : > { %v5453_v42 = vadd.f32 %v4077_v32, %v1952_v40 }
 0x388   : > { %v1996_v43 = vsel %vm1992_vm2, %v5451_v41, -inf }
 0x389   : > { %1997 = vmax.xlane.f32.xlu1 %v1996_v43  ;;  %v1993_v44 = vsel %vm1992_vm2, %v5453_v42, -inf }
 0x38a   : > { %1994 = vmax.xlane.f32.xlu0 %v1993_v44 }
 0x3f9   : > { %v4330_v49 = vpop.f32.mrb[6].mxu1 }
 0x3fa   : > { %v1955_v50 = vmul.f32 0.17677669, %v4330_v49  ;;  %v1445_v51 = vpop.f32.mrb[7].mxu1 }
 0x3fb   : > { %v1954_v53 = vmul.f32 0.17677669, %v1445_v51 }
 0x3fc   : > { %v5462_v54 = vadd.f32 %v4077_v32, %v1955_v50 }
 0x3fd   : > { %v5466_v57 = vadd.f32 %v4077_v32, %v1954_v53 }
 0x3fe   : > { %v2002_v55 = vsel %vm1992_vm2, %v5462_v54, -inf }
 0x3ff   : > { %2003 = vmax.xlane.f32.xlu0 %v2002_v55  ;;  %v1999_v61 = vsel %vm1992_vm2, %v5466_v57, -inf }
 0x401   : > { %v4337_v58 = vpop.f32.mrb[8].mxu1 }
 0x402   : > { %v1957_v59 = vmul.f32 0.17677669, %v4337_v58  ;;  %v1528_v60 = vpop.f32.mrb[9].mxu1 }
 0x403   : > { %v1956_v62 = vmul.f32 0.17677669, %v1528_v60  ;;  %2000 = vmax.xlane.f32.xlu0 %v1999_v61 }
 0x404   : > { %v5470_v63 = vadd.f32 %v4077_v32, %v1957_v59 }
 0x405   : > { %v5472_v0 = vadd.f32 %v4077_v32, %v1956_v62 }
 0x406   : > { %v4358_v1 = vpop.f32.mrb[8].mxu0  ;;  %v2008_v2 = vsel %vm1992_vm2, %v5470_v63, -inf }
 0x407   : > { %v1963_v4 = vmul.f32 0.17677669, %v4358_v1  ;;  %v1777_v5 = vpop.f32.mrb[9].mxu0  ;;  %2009 = vmax.xlane.f32.xlu0 %v2008_v2  ;;  %v2005_v6 = vsel %vm1992_vm2, %v5472_v0, -inf }
 0x408   : > { %v1962_v7 = vmul.f32 0.17677669, %v1777_v5  ;;  %2006 = vmax.xlane.f32.xlu1 %v2005_v6 }
 0x409   : > { %v4344_v8 = vpop.f32.mrb[10].mxu1  ;;  %v5481_v9 = vadd.f32 %v4078_v3, %v1963_v4 }
 0x40a   : > { %v1959_v10 = vmul.f32 0.17677669, %v4344_v8  ;;  %v1611_v11 = vpop.f32.mrb[11].mxu1  ;;  %v5483_v12 = vadd.f32 %v4078_v3, %v1962_v7 }
 0x40b   : > { %v1958_v13 = vmul.f32 0.17677669, %v1611_v11  ;;  %v2026_v14 = vsel %vm1992_vm2, %v5481_v9, -inf }
 0x40c   : > { %2027 = vmax.xlane.f32.xlu0 %v2026_v14  ;;  %v2023_v15 = vsel %vm1992_vm2, %v5483_v12, -inf  ;;  %v5489_v16 = vadd.f32 %v4077_v32, %v1959_v10 }
 0x40d   : > { %2024 = vmax.xlane.f32.xlu1 %v2023_v15  ;;  %v5491_v20 = vadd.f32 %v4077_v32, %v1958_v13 }
 0x40e   : > { %v4372_v22 = vpop.f32.mrb[10].mxu0  ;;  %v2014_v23 = vsel %vm1992_vm2, %v5489_v16, -inf }
 0x40f   : > { %v1967_v24 = vmul.f32 0.17677669, %v4372_v22  ;;  %v1943_v25 = vpop.f32.mrb[11].mxu0  ;;  %v2011_v26 = vsel %vm1992_vm2, %v5491_v20, -inf }
 0x410   : > { %v1966_v27 = vmul.f32 0.17677669, %v1943_v25  ;;  %2015 = vmax.xlane.f32.xlu0 %v2014_v23 }
 0x411   : > { %2012 = vmax.xlane.f32.xlu1 %v2011_v26  ;;  %v4351_v28 = vpop.f32.mrb[12].mxu1  ;;  %v5497_v29 = vadd.f32 %v4078_v3, %v1967_v24 }
 0x412   : > { %v1961_v30 = vmul.f32 0.17677669, %v4351_v28  ;;  %v1694_v31 = vpop.f32.mrb[13].mxu1  ;;  %v5499_v33 = vadd.f32 %v4078_v3, %v1966_v27 }
 0x413   : > { %v1960_v34 = vmul.f32 0.17677669, %v1694_v31  ;;  %v2038_v37 = vsel %vm1992_vm2, %v5497_v29, -inf }
 0x414   : > { %2039 = vmax.xlane.f32.xlu0 %v2038_v37  ;;  %v2035_v32 = vsel %vm1992_vm2, %v5499_v33, -inf  ;;  %v5505_v38 = vadd.f32 %v4078_v3, %v1961_v30 }
 0x415   : > { %2036 = vmax.xlane.f32.xlu1 %v2035_v32  ;;  %v5507_v39 = vadd.f32 %v4078_v3, %v1960_v34 }
 0x416   : > { %v2020_v40 = vsel %vm1992_vm2, %v5505_v38, -inf  ;;  %v1998_v53 = vpop.xlane.xlu1 %1997 }
 0x417   : > { %v2017_v43 = vsel %vm1992_vm2, %v5507_v39, -inf  ;;  %v2042_v55 = vsub.f32 %v5451_v41, %v1998_v53  ;;  %v1995_v62 = vpop.xlane.xlu0 %1994 }
 0x418   : > { %2021 = vmax.xlane.f32.xlu0 %v2020_v40 }
 0x419   : > { %2018 = vmax.xlane.f32.xlu1 %v2017_v43  ;;  %v4365_v44 = vpop.f32.mrb[14].mxu1  ;;  %v2059_v58 = vmul.f32 1.442695, %v2042_v55 }
 0x41a   : > { %v1965_v45 = vmul.f32 0.17677669, %v4365_v44  ;;  %v1860_v46 = vpop.f32.mrb[15].mxu1 }
 0x41b   : > { %v1964_v47 = vmul.f32 0.17677669, %v1860_v46  ;;  %4793 = vpow2.f32 %v2059_v58 }
 0x41c   : > { %v5513_v49 = vadd.f32 %v4078_v3, %v1965_v45 }
 0x41d   : > { %v5515_v50 = vadd.f32 %v4078_v3, %v1964_v47 }
 0x41e   : > { %v2032_v51 = vsel %vm1992_vm2, %v5513_v49, -inf }
 0x41f   : > { %2033 = vmax.xlane.f32.xlu0 %v2032_v51  ;;  %v2029_v59 = vsel %vm1992_vm2, %v5515_v50, -inf }
 0x425   : > { %v5526_v60 = vpop.eup %4793 }
 0x426   : > { %v2092_v61 = vsel %vm1992_vm2, %v5526_v60, 0.0 }
 0x42a   : > { %4664 = vrot.lane.b32.xlu1 %v5388_v56, %s5024_s25 }
 0x435   : > { %4659 = vrot.lane.b32.xlu0 %v5388_v56, %s5023_s18  ;;  %v2041_v56 = vsub.f32 %v5453_v42, %v1995_v62 }
 0x437   : > { %v2057_v1 = vmul.f32 1.442695, %v2041_v56 }
 0x439   : > { %4795 = vpow2.f32 %v2057_v1 }
 0x443   : > { %v5533_v41 = vpop.eup %4795 }
 0x444   : > { %v2089_v2 = vsel %vm1992_vm2, %v5533_v41, 0.0 }
 0x44e   : > { %2030 = vmax.xlane.f32.xlu1 %v2029_v59 }
 0x454   : > { %2093 = vadd.xlane.f32.xlu0 %v2092_v61 }
 0x45f   : > { %4669 = vrot.lane.b32.xlu1 %v5442_v35, %s5022_s21 }
 0x483   : > { %2090 = vadd.xlane.f32.xlu1 %v2089_v2 }
 0x48c   : > { %v2004_v3 = vpop.xlane.xlu0 %2003 }
 0x48d   : > { %v2044_v4 = vsub.f32 %v5462_v54, %v2004_v3 }
 0x48f   : > { %v2063_v5 = vmul.f32 1.442695, %v2044_v4 }
 0x490   : > { %v2001_v6 = vpop.xlane.xlu0 %2000 }
 0x491   : > { %4797 = vpow2.f32 %v2063_v5  ;;  %v2043_v7 = vsub.f32 %v5466_v57, %v2001_v6 }
 0x493   : > { %v2061_v8 = vmul.f32 1.442695, %v2043_v7 }
 0x494   : > { %v2010_v10 = vpop.xlane.xlu0 %2009 }
 0x495   : > { %4799 = vpow2.f32 %v2061_v8  ;;  %v2046_v42 = vsub.f32 %v5470_v63, %v2010_v10  ;;  %v2007_v11 = vpop.xlane.xlu1 %2006 }
 0x496   : > { %v2045_v13 = vsub.f32 %v5472_v0, %v2007_v11 }
 0x497   : > { %v2067_v14 = vmul.f32 1.442695, %v2046_v42 }
 0x498   : > { %v2065_v15 = vmul.f32 1.442695, %v2045_v13 }
 0x499   : > { %4801 = vpow2.f32 %v2067_v14  ;;  %v2028_v22 = vpop.xlane.xlu0 %2027 }
 0x49a   : > { %4803 = vpow2.f32 %v2065_v15  ;;  %v2052_v54 = vsub.f32 %v5481_v9, %v2028_v22  ;;  %v2025_v23 = vpop.xlane.xlu1 %2024 }
 0x49b   : > { %v5542_v24 = vpop.eup %4797  ;;  %v2051_v57 = vsub.f32 %v5483_v12, %v2025_v23 }
 0x49c   : > { %v2079_v25 = vmul.f32 1.442695, %v2052_v54  ;;  %v2098_v26 = vsel %vm1992_vm2, %v5542_v24, 0.0 }
 0x49d   : > { %v2077_v63 = vmul.f32 1.442695, %v2051_v57  ;;  %v2016_v27 = vpop.xlane.xlu0 %2015  ;;  %2099 = vadd.xlane.f32.xlu0 %v2098_v26 }
 0x49e   : > { %4805 = vpow2.f32 %v2079_v25  ;;  %v2048_v0 = vsub.f32 %v5489_v16, %v2016_v27  ;;  %v2013_v28 = vpop.xlane.xlu1 %2012 }
 0x49f   : > { %v5548_v30 = vpop.eup %4799  ;;  %4807 = vpow2.f32 %v2077_v63  ;;  %v2047_v9 = vsub.f32 %v5491_v20, %v2013_v28 }
 0x4a0   : > { %v2071_v31 = vmul.f32 1.442695, %v2048_v0  ;;  %v2095_v12 = vsel %vm1992_vm2, %v5548_v30, 0.0 }
 0x4a1   : > { %v2069_v34 = vmul.f32 1.442695, %v2047_v9  ;;  %v2040_v37 = vpop.xlane.xlu0 %2039  ;;  %2096 = vadd.xlane.f32.xlu1 %v2095_v12 }
 0x4a2   : > { %4809 = vpow2.f32 %v2071_v31  ;;  %v2056_v32 = vsub.f32 %v5497_v29, %v2040_v37  ;;  %v2037_v40 = vpop.xlane.xlu1 %2036 }
 0x4a3   : > { %v5554_v43 = vpop.eup %4801  ;;  %4811 = vpow2.f32 %v2069_v34  ;;  %v2055_v16 = vsub.f32 %v5499_v33, %v2037_v40 }
 0x4a4   : > { %v5557_v44 = vpop.eup %4803  ;;  %v2087_v45 = vmul.f32 1.442695, %v2056_v32  ;;  %v2104_v20 = vsel %vm1992_vm2, %v5554_v43, 0.0 }
 0x4a5   : > { %v2085_v46 = vmul.f32 1.442695, %v2055_v16  ;;  %v2022_v47 = vpop.xlane.xlu0 %2021  ;;  %2105 = vadd.xlane.f32.xlu0 %v2104_v20  ;;  %v2101_v51 = vsel %vm1992_vm2, %v5557_v44, 0.0 }
 0x4a6   : > { %4813 = vpow2.f32 %v2087_v45  ;;  %v2050_v29 = vsub.f32 %v5505_v38, %v2022_v47  ;;  %v2019_v53 = vpop.xlane.xlu1 %2018  ;;  %2102 = vadd.xlane.f32.xlu1 %v2101_v51 }
 0x4a7   : > { %4815 = vpow2.f32 %v2085_v46  ;;  %v2049_v33 = vsub.f32 %v5507_v39, %v2019_v53 }
 0x4a8   : > { %v5565_v55 = vpop.eup %4805  ;;  %v2075_v58 = vmul.f32 1.442695, %v2050_v29 }
 0x4a9   : > { %v5567_v59 = vpop.eup %4807  ;;  %v2073_v61 = vmul.f32 1.442695, %v2049_v33  ;;  %v2122_v62 = vsel %vm1992_vm2, %v5565_v55, 0.0 }
 0x4aa   : > { %4817 = vpow2.f32 %v2075_v58  ;;  %2123 = vadd.xlane.f32.xlu0 %v2122_v62  ;;  %v2119_v56 = vsel %vm1992_vm2, %v5567_v59, 0.0  ;;  %v4665_v25 = vpop.permute.xlu1 %4664 }
 0x4ab   : > { %4819 = vpow2.f32 %v2073_v61  ;;  %2120 = vadd.xlane.f32.xlu1 %v2119_v56  ;;  %v4667_v32 = vunpack.i.h.bf16 %v4665_v25 }
 0x4ac   : > { %v5573_v38 = vpop.eup %4809  ;;  %v2034_v1 = vpop.xlane.xlu0 %2033 }
 0x4ad   : > { %v5575_v39 = vpop.eup %4811  ;;  %v2054_v2 = vsub.f32 %v5513_v49, %v2034_v1  ;;  %v2110_v3 = vsel %vm1992_vm2, %v5573_v38, 0.0 }
 0x4ae   : > { %2111 = vadd.xlane.f32.xlu0 %v2110_v3  ;;  %v2107_v4 = vsel %vm1992_vm2, %v5575_v39, 0.0 }
 0x4af   : > { %v2083_v5 = vmul.f32 1.442695, %v2054_v2  ;;  %2108 = vadd.xlane.f32.xlu1 %v2107_v4 }
 0x4b0   : > { %v5582_v6 = vpop.eup %4813  ;;  %v4660_v7 = vpop.permute.xlu0 %4659 }
 0x4b1   : > { %v5584_v8 = vpop.eup %4815  ;;  %4821 = vpow2.f32 %v2083_v5  ;;  %v4662_v10 = vunpack.i.h.bf16 %v4660_v7  ;;  %v4661_v42 = vunpack.i.l.bf16 %v4660_v7  ;;  %v2134_v49 = vsel %vm1992_vm2, %v5582_v6, 0.0 }
 0x4b2   : > { %2135 = vadd.xlane.f32.xlu0 %v2134_v49  ;;  %v2131_v11 = vsel %vm1992_vm2, %v5584_v8, 0.0 }
 0x4b3   : > { %v4545_v13 = vpack.c.bf16 %v4662_v10, %v4661_v42  ;;  %2132 = vadd.xlane.f32.xlu1 %v2131_v11 }
 0x4b4   : > { %v5590_v14 = vpop.eup %4817 }
 0x4b5   : > { %v5592_v15 = vpop.eup %4819  ;;  %4546 = vmatprep.subr.bf16.mxu0 %v4545_v13  ;;  %v2116_v22 = vsel %vm1992_vm2, %v5590_v14, 0.0 }
 0x4b6   : > { %2117 = vadd.xlane.f32.xlu0 %v2116_v22  ;;  %4548 = vmatpush3.bf16.msra.mxu0 %v4545_v13  ;;  %v2113_v54 = vsel %vm1992_vm2, %v5592_v15, 0.0 }
 0x4b7   : > { %4554 = vmatprep.subr.bf16.mxu0 %v5446_v36  ;;  %2114 = vadd.xlane.f32.xlu1 %v2113_v54 }
 0x4bb   : > { %v5599_v23 = vpop.eup %4821 }
 0x4bc   : > { %v2128_v57 = vsel %vm1992_vm2, %v5599_v23, 0.0 }
 0x4bd   : > { %2129 = vadd.xlane.f32.xlu0 %v2128_v57 }
 0x4d3   : > { %4674 = vrot.lane.b32.xlu0 %v5442_v35, %s5023_s18 }
 0x4db   : > { %v2031_v26 = vpop.xlane.xlu1 %2030 }
 0x4dc   : > { %v2053_v63 = vsub.f32 %v5515_v50, %v2031_v26  ;;  %v4666_v50 = vunpack.i.l.bf16 %v4665_v25 }
 0x4de   : > { %v2081_v27 = vmul.f32 1.442695, %v2053_v63  ;;  %v4549_v45 = vpack.c.bf16 %v4667_v32, %v4666_v50 }
 0x4df   : > { %v4670_v9 = vpop.permute.xlu1 %4669 }
 0x4e0   : > { %4823 = vpow2.f32 %v2081_v27  ;;  %v4672_v53 = vunpack.i.h.bf16 %v4670_v9  ;;  %v4671_v33 = vunpack.i.l.bf16 %v4670_v9 }
 0x4e1   : > { %v2094_v31 = vpop.xlane.xlu0 %2093 }
 0x4e2   : > { %4825 = vrcp.f32 %v2094_v31  ;;  %v4557_v1 = vpack.c.bf16 %v4672_v53, %v4671_v33 }
 0x4ea   : > { %v5606_v0 = vpop.eup %4823 }
 0x4eb   : > { %v2125_v28 = vsel %vm1992_vm2, %v5606_v0, 0.0 }
 0x4ec   : > { %2126 = vadd.xlane.f32.xlu1 %v2125_v28  ;;  %v4826_v34 = vpop.eup %4825 }
 0x4ed   : > { %v2154_v16 = vmul.f32 %v4826_v34, %v5526_v60 }
 0x4fd   : > { %4679 = vrot.lane.b32.xlu1 %v5442_v35, %s5024_s25 }
 0x510   : > { %v2091_v12 = vpop.xlane.xlu1 %2090 }
 0x511   : > { %4827 = vrcp.f32 %v2091_v12 }
 0x51b   : > { %v4828_v37 = vpop.eup %4827 }
 0x51c   : > { %v2153_v40 = vmul.f32 %v4828_v37, %v5533_v41 }
 0x51e   : > { %4377 = vmatprep.mubr.msk.f32.mxu1 %vm1992_vm2, %v2153_v40 }
 0x51f   : > { %4378 = vmatmul.mubr.msk.f32.vlgmr.msra.gmra.mrb[16].mxu1 %vm1992_vm2, %v2154_v16 }
 0x520   : > { %4544 = vmatpush3.bf16.msra.mxu1 %v5459_v48 }
 0x521   : > { %4550 = vmatprep.subr.bf16.mxu1 %v4549_v45 }
 0x52a   : > { %v2100_v35 = vpop.xlane.xlu0 %2099 }
 0x52b   : > { %4829 = vrcp.f32 %v2100_v35 }
 0x52e   : > { %v2097_v20 = vpop.xlane.xlu1 %2096 }
 0x52f   : > { %4831 = vrcp.f32 %v2097_v20 }
 0x532   : > { %v2106_v46 = vpop.xlane.xlu0 %2105 }
 0x533   : > { %4833 = vrcp.f32 %v2106_v46  ;;  %v2103_v47 = vpop.xlane.xlu1 %2102  ;;  %v4745_v46 = vld [vmem:[%s5226_s4] sm:$0xff]  }
 0x534   : > { %4835 = vrcp.f32 %v2103_v47  ;;  %v4746_v47 = vld [vmem:[%s5226_s4 + $0x8] sm:$0xff]  }
 0x535   : > { %v4830_v41 = vpop.eup %4829 }
 0x536   : > { %v2156_v61 = vmul.f32 %v4830_v41, %v5542_v24 }
 0x537   : > { %v2124_v51 = vpop.xlane.xlu0 %2123 }
 0x538   : > { %v2121_v29 = vpop.xlane.xlu1 %2120 }
 0x539   : > { %v4832_v60 = vpop.eup %4831  ;;  %4837 = vrcp.f32 %v2121_v29  ;;  %v4747_v29 = vld [vmem:[%s5226_s4 + $0x10] sm:$0xff]  }
 0x53a   : > { %v2155_v58 = vmul.f32 %v4832_v60, %v5548_v30 }
 0x53b   : > { %v2112_v48 = vpop.xlane.xlu0 %2111 }
 0x53c   : > { %4839 = vrcp.f32 %v2112_v48  ;;  %4384 = vmatprep.mubr.msk.f32.mxu1 %vm1992_vm2, %v2155_v58  ;;  %v2109_v62 = vpop.xlane.xlu1 %2108  ;;  %v4748_v58 = vld [vmem:[%s5226_s4 + $0x18] sm:$0xff]  }
 0x53d   : > { %v4834_v56 = vpop.eup %4833  ;;  %4841 = vrcp.f32 %v2109_v62  ;;  %4385 = vmatmul.mubr.msk.f32.vlgmr.msra.gmra.mrb[18].mxu1 %vm1992_vm2, %v2156_v61 }
 0x53e   : > { %v4836_v2 = vpop.eup %4835  ;;  %4552 = vmatpush3.bf16.msra.mxu1 %v4549_v45  ;;  %v2158_v30 = vmul.f32 %v4834_v56, %v5554_v43  ;;  %4843 = vrcp.f32 %v2124_v51  ;;  %v4749_v56 = vld [vmem:[%s5226_s4 + $0x20] sm:$0xff]  }
 0x53f   : > { %4558 = vmatprep.subr.bf16.mxu1 %v4557_v1  ;;  %v2136_v3 = vpop.xlane.xlu0 %2135  ;;  %v2157_v4 = vmul.f32 %v4836_v2, %v5557_v44  ;;  %v4751_v2 = vld [vmem:[%s5226_s4 + $0x30] sm:$0xff]  }
 0x540   : > { %v2133_v24 = vpop.xlane.xlu1 %2132 }
 0x541   : > { %4845 = vrcp.f32 %v2133_v24  ;;  %4391 = vmatprep.mubr.msk.f32.mxu0 %vm1992_vm2, %v2157_v4 }
 0x542   : > { %4392 = vmatmul.mubr.msk.f32.vlgmr.msra.gmra.mrb[12].mxu0 %vm1992_vm2, %v2158_v30 }
 0x543   : > { %4556 = vmatpush3.bf16.msra.mxu0 %v5446_v36  ;;  %v2118_v5 = vpop.xlane.xlu0 %2117  ;;  %v4838_v10 = vpop.eup %4837 }
 0x544   : > { %4847 = vrcp.f32 %v2118_v5  ;;  %v2115_v7 = vpop.xlane.xlu1 %2114  ;;  %v2163_v22 = vmul.f32 %v4838_v10, %v5567_v59 }
 0x545   : > { %4849 = vrcp.f32 %v2115_v7 }
 0x546   : > { %v4840_v42 = vpop.eup %4839  ;;  %4851 = vrcp.f32 %v2136_v3  ;;  %v4752_v3 = vld [vmem:[%s5226_s4 + $0x38] sm:$0xff]  }
 0x547   : > { %v4842_v49 = vpop.eup %4841  ;;  %v2160_v43 = vmul.f32 %v4840_v42, %v5573_v38 }
 0x548   : > { %v2159_v44 = vmul.f32 %v4842_v49, %v5575_v39  ;;  %v4844_v11 = vpop.eup %4843 }
 0x549   : > { %v2164_v36 = vmul.f32 %v4844_v11, %v5565_v55 }
 0x54a   : > { %v2130_v13 = vpop.xlane.xlu0 %2129  ;;  %4398 = vmatprep.mubr.msk.f32.mxu1 %vm1992_vm2, %v2159_v44 }
 0x54b   : > { %v4846_v54 = vpop.eup %4845  ;;  %4399 = vmatmul.mubr.msk.f32.vlgmr.msra.gmra.mrb[20].mxu1 %vm1992_vm2, %v2160_v43  ;;  %4853 = vrcp.f32 %v2130_v13 }
 0x54c   : > { %4560 = vmatpush3.bf16.msra.mxu1 %v4557_v1  ;;  %4412 = vmatprep.mubr.msk.f32.mxu1 %vm1992_vm2, %v2163_v22  ;;  %v2167_v39 = vmul.f32 %v4846_v54, %v5584_v8  ;;  %v4750_v1 = vld [vmem:[%s5226_s4 + $0x28] sm:$0xff]   ;;  %s5912_s4 = sld [smem:[#allocation24_spill]] (!%p4141_p10) }
 0x54e   : > { %v4848_v57 = vpop.eup %4847  ;;  %v4675_v25 = vpop.permute.xlu0 %4674 }
 0x54f   : > { %v4850_v26 = vpop.eup %4849  ;;  %v4677_v38 = vunpack.i.h.bf16 %v4675_v25  ;;  %v4676_v63 = vunpack.i.l.bf16 %v4675_v25  ;;  %4413 = vmatmul.mubr.msk.f32.vlgmr.msra.gmra.mrb[22].mxu1 %vm1992_vm2, %v2164_v36  ;;  %v2162_v27 = vmul.f32 %v4848_v57, %v5590_v14 }
 0x550   : > { %4426 = vmatprep.mubr.msk.f32.mxu1 %vm1992_vm2, %v2167_v39  ;;  %v2161_v59 = vmul.f32 %v4850_v26, %v5592_v15  ;;  %v4852_v34 = vpop.eup %4851 }
 0x551   : > { %v4561_v28 = vpack.c.bf16 %v4677_v38, %v4676_v63  ;;  %v2168_v37 = vmul.f32 %v4852_v34, %v5582_v6 }
 0x552   : > { %4405 = vmatprep.mubr.msk.f32.mxu0 %vm1992_vm2, %v2161_v59 }
 0x553   : > { %4406 = vmatmul.mubr.msk.f32.vlgmr.msra.gmra.mrb[14].mxu0 %vm1992_vm2, %v2162_v27  ;;  %4562 = vmatprep.subr.bf16.mxu0 %v4561_v28 }
 0x554   : > { %4564 = vmatpush3.bf16.msra.mxu0 %v4561_v28 }
 0x555   : > { %v4854_v15 = vpop.eup %4853  ;;  %4429 = vmatprep.subr.bf16.mxu0 %v4745_v46 }
 0x556   : > { %v2166_v50 = vmul.f32 %v4854_v15, %v5599_v23 }
 0x579   : > { %v2127_v55 = vpop.xlane.xlu1 %2126 }
 0x57a   : > { %4855 = vrcp.f32 %v2127_v55 }
 0x57d   : > { %v4680_v8 = vpop.permute.xlu1 %4679 }
 0x57e   : > { %v4682_v9 = vunpack.i.h.bf16 %v4680_v8  ;;  %v4681_v31 = vunpack.i.l.bf16 %v4680_v8 }
 0x580   : > { %v4565_v12 = vpack.c.bf16 %v4682_v9, %v4681_v31 }
 0x582   : > { %4566 = vmatprep.subr.bf16.mxu1 %v4565_v12 }
 0x583   : > { %4568 = vmatpush3.bf16.msra.mxu1 %v4565_v12 }
 0x584   : > { %v4856_v14 = vpop.eup %4855 }
 0x585   : > { %v2165_v32 = vmul.f32 %v4856_v14, %v5606_v0 }
 0x586   : > { %4427 = vmatmul.mubr.msk.f32.vlgmr.msra.gmra.mrb[24].mxu1 %vm1992_vm2, %v2168_v37 }
 0x587   : > { %4419 = vmatprep.mubr.msk.f32.mxu0 %vm1992_vm2, %v2165_v32  ;;  %3214 = vmatprep.mubr.bf16.mxu1 %v5021_v52 }
 0x588   : > { %4420 = vmatmul.mubr.msk.f32.vlgmr.msra.gmra.mrb[16].mxu0 %vm1992_vm2, %v2166_v50 }
 0x589   : > { %4430 = vmatpush3.bf16.msra.mxu0 %v4745_v46 }
 0x58a   : > { %4431 = vmatprep.subr.bf16.mxu0 %v4746_v47 }
 0x58d   : > { %4432 = vmatpush3.bf16.msra.mxu0 %v4746_v47 }
 0x58e   : > { %4433 = vmatprep.subr.bf16.mxu0 %v4747_v29 }
 0x591   : > { %4434 = vmatpush3.bf16.msra.mxu0 %v4747_v29 }
 0x592   : > { %4435 = vmatprep.subr.bf16.mxu0 %v4748_v58 }
 0x595   : > { %4436 = vmatpush3.bf16.msra.mxu0 %v4748_v58  ;;  %v4891_v58 = vld [vmem:[#allocation2 + $0x10] sm:$0xff] }
 0x596   : > { %4437 = vmatprep.subr.bf16.mxu0 %v4749_v56 }
 0x599   : > { %4438 = vmatpush3.bf16.msra.mxu0 %v4749_v56  ;;  %v4753_v56 = vld [vmem:[%s5254_s0] ss:$8 sps:$4 sm:$0xff]  }
 0x59a   : > { %4439 = vmatprep.subr.bf16.mxu0 %v4750_v1 }
 0x59d   : > { %4440 = vmatpush3.bf16.msra.mxu0 %v4750_v1  ;;  %v4755_v1 = vld [vmem:[%s5254_s0 + $0x4] ss:$8 sps:$4 sm:$0xff]  }
 0x59e   : > { %4441 = vmatprep.subr.bf16.mxu0 %v4751_v2  ;;  %3182 = vmatprep.subr.bf16.mxu1 %v4755_v1 }
 0x59f   : > { %3183 = vmatpush1.bf16.msra.mxu1 %v4753_v56 }
 0x5a1   : > { %4442 = vmatpush3.bf16.msra.mxu0 %v4751_v2  ;;  %v4758_v2 = vld [vmem:[%s5254_s0 + $0x14] ss:$8 sps:$4 sm:$0xff]  }
 0x5a2   : > { %4443 = vmatprep.subr.bf16.mxu0 %v4752_v3  ;;  %3184 = vmatprep.subr.bf16.mxu1 %v4758_v2 }
 0x5a5   : > { %4444 = vmatpush3.bf16.msra.mxu0 %v4752_v3  ;;  %v4756_v3 = vld [vmem:[%s5254_s0 + $0x10] ss:$8 sps:$4 sm:$0xff]  }
 0x5a6   : > { %3185 = vmatpush1.bf16.msra.mxu1 %v4756_v3 }
 0x5f2   : > { %v4379_v40 = vpop.f32.mrb[16].mxu1 }
 0x5f3   : > { %v2241_v16 = vpop.f32.mrb[17].mxu1 }
 0x610   : > { %v4386_v45 = vpop.f32.mrb[18].mxu1 }
 0x611   : > { %v2322_v35 = vpop.f32.mrb[19].mxu1 }
 0x612   : > { %v4683_v6 = vpack.i.bf16 %v4386_v45, %v2322_v35  ;;  %v4095_v35 = vld [vmem:[%s5908_s30] ss:$0 sm:$0xff] }
 0x614   : > { %4684 = vrot.lane.b32.xlu0 %v4683_v6, %s5024_s25 }
 0x615   : > { %v4393_v0 = vpop.f32.mrb[12].mxu0 }
 0x616   : > { %v2403_v20 = vpop.f32.mrb[13].mxu0 }
 0x617   : > { %v4688_v23 = vpack.i.bf16 %v4393_v0, %v2403_v20 }
 0x619   : > { %4689 = vrot.lane.b32.xlu1 %v4688_v23, %s5023_s18 }
 0x61e   : > { %v4400_v51 = vpop.f32.mrb[20].mxu1 }
 0x61f   : > { %v2484_v41 = vpop.f32.mrb[21].mxu1 }
 0x620   : > { %v4693_v60 = vpack.i.bf16 %v4400_v51, %v2484_v41  ;;  %v4889_v41 = vld [vmem:[#allocation2] sm:$0xff] }
 0x622   : > { %4694 = vrot.lane.b32.xlu1 %v4693_v60, %s5022_s21  ;;  %v4414_v53 = vpop.f32.mrb[22].mxu1  ;;  %v4890_v60 = vld [vmem:[#allocation2 + $0x8] sm:$0xff] }
 0x623   : > { %v2646_v33 = vpop.f32.mrb[23].mxu1 }
 0x624   : > { %v4698_v61 = vpack.i.bf16 %v4414_v53, %v2646_v33 }
 0x626   : > { %v4407_v48 = vpop.f32.mrb[14].mxu0  ;;  %4699 = vrot.lane.b32.xlu0 %v4698_v61, %s5024_s25 }
 0x627   : > { %v2565_v62 = vpop.f32.mrb[15].mxu0 }
 0x659   : > { %v4428_v4 = vpop.f32.mrb[24].mxu1 }
 0x65a   : > { %v2808_v30 = vpop.f32.mrb[25].mxu1 }
 0x65b   : > { %v4708_v24 = vpack.i.bf16 %v4428_v4, %v2808_v30  ;;  %v4421_v5 = vpop.f32.mrb[16].mxu0 }
 0x65c   : > { %v2727_v7 = vpop.f32.mrb[17].mxu0 }
 0x65d   : > { %v4703_v10 = vpack.i.bf16 %v4421_v5, %v2727_v7  ;;  %4709 = vrot.lane.b32.xlu1 %v4708_v24, %s5022_s21 }
 0x65f   : > { %4704 = vrot.lane.b32.xlu0 %v4703_v10, %s5023_s18  ;;  %s5910_s18 = scalar_lea.vmem %s5856_s9, %s5218_s26 }
 0x686   : > { %v4685_v42 = vpop.permute.xlu0 %4684 }
 0x687   : > { %v4687_v44 = vunpack.i.h.bf16 %v4685_v42  ;;  %v4686_v43 = vunpack.i.l.bf16 %v4685_v42 }
 0x689   : > { %v2842_v54 = vsel %vm1287_vm0, %v4379_v40, %v4687_v44  ;;  %v2841_v36 = vsel %vm1287_vm0, %v2241_v16, %v4686_v43 }
 0x68b   : > { %v4690_v49 = vpop.permute.xlu1 %4689 }
 0x68c   : > { %v4692_v11 = vunpack.i.h.bf16 %v4690_v49  ;;  %v4691_v13 = vunpack.i.l.bf16 %v4690_v49 }
 0x68e   : > { %v2845_v39 = vsel %vm2843_vm3, %v2842_v54, %v4692_v11  ;;  %v2844_v26 = vsel %vm2843_vm3, %v2841_v36, %v4691_v13 }
 0x694   : > { %v4695_v22 = vpop.permute.xlu1 %4694 }
 0x695   : > { %v4697_v57 = vunpack.i.h.bf16 %v4695_v22  ;;  %v4696_v25 = vunpack.i.l.bf16 %v4695_v22 }
 0x697   : > { %v2847_v38 = vsel %vm2846_vm4, %v2844_v26, %v4696_v25  ;;  %v2848_v63 = vsel %vm2846_vm4, %v2845_v39, %v4697_v57  ;;  %v4761_v25 = vld [vmem:[%s5254_s0 + $0x24] ss:$8 sps:$4 sm:$0xff]   ;;  %v4759_v39 = vld [vmem:[%s5254_s0 + $0x20] ss:$8 sps:$4 sm:$0xff]   ;;  %v4764_v26 = vld [vmem:[%s5254_s0 + $0x34] ss:$8 sps:$4 sm:$0xff]  }
 0x698   : > { %v2879_v59 = vpack.c.bf16 %v2848_v63, %v2847_v38  ;;  %v4700_v27 = vpop.permute.xlu0 %4699  ;;  %3186 = vmatprep.subr.bf16.mxu1 %v4761_v25  ;;  %v4762_v38 = vld [vmem:[%s5254_s0 + $0x30] ss:$8 sps:$4 sm:$0xff]   ;;  %v4767_v63 = vld [vmem:[%s5254_s0 + $0x44] ss:$8 sps:$4 sm:$0xff]   ;;  %v3090_v25 = vld [vmem:[%s5260_s16] sm:$0x3] }
 0x699   : > { %v4702_v28 = vunpack.i.h.bf16 %v4700_v27  ;;  %v4701_v55 = vunpack.i.l.bf16 %v4700_v27  ;;  %3187 = vmatpush1.bf16.msra.mxu1 %v4759_v39  ;;  %v4770_v27 = vld [vmem:[%s5254_s0 + $0x54] ss:$8 sps:$4 sm:$0xff]   ;;  %v3095_v39 = vrot.slane %v3090_v25, %v946_v19 }
 0x69a   : > { %4445 = vmatprep.mubr.bf16.mxu0 %v2879_v59  ;;  %3188 = vmatprep.subr.bf16.mxu1 %v4764_v26  ;;  %v4765_v59 = vld [vmem:[%s5254_s0 + $0x40] ss:$8 sps:$4 sm:$0xff]   ;;  %v3099_v26 = vrot.slane %v3090_v25, %v950_v21 }
 0x69b   : > { %v2874_v34 = vsel %vm1287_vm0, %v4407_v48, %v4702_v28  ;;  %v2873_v15 = vsel %vm1287_vm0, %v2565_v62, %v4701_v55  ;;  %v4892_v48 = vld [vmem:[#allocation2 + $0x18] sm:$0xff]  ;;  %v4773_v55 = vld [vmem:[%s5254_s0 + $0x64] ss:$8 sps:$4 sm:$0xff]  }
 0x69c   : > { %v4768_v28 = vld [vmem:[%s5254_s0 + $0x50] ss:$8 sps:$4 sm:$0xff]  }
 0x69d   : > { %3189 = vmatpush1.bf16.msra.mxu1 %v4762_v38 }
 0x69e   : > { %3190 = vmatprep.subr.bf16.mxu1 %v4767_v63 }
 0x6a1   : > { %3191 = vmatpush1.bf16.msra.mxu1 %v4765_v59 }
 0x6a2   : > { %3192 = vmatprep.subr.bf16.mxu1 %v4770_v27 }
 0x6a5   : > { %3193 = vmatpush1.bf16.msra.mxu1 %v4768_v28 }
 0x6a6   : > { %3194 = vmatprep.subr.bf16.mxu1 %v4773_v55 }
 0x6cf   : > { %v4710_v8 = vpop.permute.xlu1 %4709 }
 0x6d0   : > { %v4712_v14 = vunpack.i.h.bf16 %v4710_v8  ;;  %v4711_v37 = vunpack.i.l.bf16 %v4710_v8  ;;  %v4771_v8 = vld [vmem:[%s5254_s0 + $0x60] ss:$8 sps:$4 sm:$0xff]  }
 0x6d1   : > { %v4705_v9 = vpop.permute.xlu0 %4704  ;;  %3195 = vmatpush1.bf16.msra.mxu1 %v4771_v8 }
 0x6d2   : > { %v4707_v31 = vunpack.i.h.bf16 %v4705_v9  ;;  %v4706_v12 = vunpack.i.l.bf16 %v4705_v9  ;;  %v4776_v9 = vld [vmem:[%s5254_s0 + $0x74] ss:$8 sps:$4 sm:$0xff]  }
 0x6d3   : > { %3196 = vmatprep.subr.bf16.mxu1 %v4776_v9 }
 0x6d4   : > { %v2875_v32 = vsel %vm2843_vm3, %v2873_v15, %v4706_v12  ;;  %v2876_v50 = vsel %vm2843_vm3, %v2874_v34, %v4707_v31  ;;  %v4774_v31 = vld [vmem:[%s5254_s0 + $0x70] ss:$8 sps:$4 sm:$0xff]  }
 0x6d5   : > { %v2877_v40 = vsel %vm2846_vm4, %v2875_v32, %v4711_v37  ;;  %v2878_v16 = vsel %vm2846_vm4, %v2876_v50, %v4712_v14  ;;  %3197 = vmatpush1.bf16.msra.mxu1 %v4774_v31 }
 0x6d6   : > { %v2880_v45 = vpack.c.bf16 %v2878_v16, %v2877_v40 }
 0x6d8   : > { %4446 = vmatmul.mubr.bf16.vlgmr.msra.gmra.mrb[20].mxu0 %v2880_v45 }
 0x7ab   : > { %v4447_v6 = vpop.f32.mrb[20].mxu0 }
 0x7ac   : > { %v2986_v0 = vpop.f32.mrb[21].mxu0  ;;  %v2995_v47 = vadd.f32 %v4447_v6, %v4095_v35 }
 0x7ad   : > { %v2987_v20 = vadd.f32 %v4095_v35, %v2986_v0  ;;  %v4448_v23 = vpop.f32.mrb[22].mxu0 }
 0x7ae   : > { %v2989_v46 = vpop.f32.mrb[23].mxu0  ;;  %v2998_v33 = vadd.f32 %v4448_v23, %v4095_v35  ;;  %v3003_v61 = vadd.f32 %v4891_v58, %v2995_v47 }
 0x7af   : > { %v2990_v51 = vadd.f32 %v4095_v35, %v2989_v46  ;;  %v3001_v29 = vadd.f32 %v4889_v41, %v2987_v20  ;;  %v4104_v20 = vld [vmem:[%s5909_s23] ss:$0 sm:$0xff] }
 0x7b0   : > { %v3004_v62 = vadd.f32 %v4892_v48, %v2998_v33 }
 0x7b1   : > { %3007 = vadd.xlane.f32.xlu0 %v3001_v29  ;;  %v3002_v53 = vadd.f32 %v4890_v60, %v2990_v51 }
 0x7b3   : > { %3009 = vadd.xlane.f32.xlu1 %v3002_v53 }
 0x7b5   : > { %3011 = vadd.xlane.f32.xlu0 %v3003_v61 }
 0x7b9   : > { %3013 = vadd.xlane.f32.xlu0 %v3004_v62 }
 0x83e   : > { %v3008_v4 = vpop.xlane.xlu0 %3007 }
 0x83f   : > { %v3016_v30 = vmul.f32 0.0078125, %v3008_v4 }
 0x840   : > { %v3010_v24 = vpop.xlane.xlu1 %3009 }
 0x841   : > { %v3020_v5 = vsub.f32 %v3001_v29, %v3016_v30  ;;  %v3017_v7 = vmul.f32 0.0078125, %v3010_v24  ;;  %v4105_v29 = vld [vmem:[%s5910_s18] ss:$0 sm:$0xff] }
 0x842   : > { %v3012_v10 = vpop.xlane.xlu0 %3011  ;;  %v4777_v30 = vld [vmem:[%s5265_s17 + $0x40] sm:$0xff]  }
 0x843   : > { %v3021_v42 = vsub.f32 %v3002_v53, %v3017_v7  ;;  %v3018_v49 = vmul.f32 0.0078125, %v3012_v10  ;;  %v3024_v44 = vmul.f32 %v3020_v5, %v3020_v5  ;;  %v4778_v24 = vld [vmem:[%s5265_s17] sm:$0xff]   ;;  %4251 = vmatprep.subr.bf16.mxu0 %v4777_v30  ;;  %v4780_v7 = vld [vmem:[%s5265_s17 + $0x8] sm:$0xff]   ;;  %v4782_v10 = vld [vmem:[%s5265_s17 + $0x10] sm:$0xff]  }
 0x844   : > { %4252 = vmatpush3.bf16.msra.mxu0 %v4778_v24 }
 0x845   : > { %v3022_v43 = vsub.f32 %v3003_v61, %v3018_v49  ;;  %3028 = vadd.xlane.f32.xlu1 %v3024_v44  ;;  %v3025_v11 = vmul.f32 %v3021_v42, %v3021_v42  ;;  %v4784_v49 = vld [vmem:[%s5265_s17 + $0x18] sm:$0xff]   ;;  %v4785_v44 = vld [vmem:[%s5265_s17 + $0x60] sm:$0xff]  }
 0x846   : > { %v3014_v13 = vpop.xlane.xlu0 %3013 }
 0x847   : > { %v3019_v22 = vmul.f32 0.0078125, %v3014_v13  ;;  %3030 = vadd.xlane.f32.xlu0 %v3025_v11  ;;  %v3026_v54 = vmul.f32 %v3022_v43, %v3022_v43  ;;  %v4787_v11 = vld [vmem:[%s5265_s17 + $0x68] sm:$0xff]  }
 0x848   : > { %v4788_v13 = vld [vmem:[%s5265_s17 + $0x28] sm:$0xff]  }
 0x849   : > { %v3023_v36 = vsub.f32 %v3004_v62, %v3019_v22  ;;  %3032 = vadd.xlane.f32.xlu1 %v3026_v54  ;;  %v4789_v22 = vld [vmem:[%s5265_s17 + $0x70] sm:$0xff]  }
 0x84a   : > { %v4790_v54 = vld [vmem:[%s5265_s17 + $0x30] sm:$0xff]  }
 0x84b   : > { %v3027_v57 = vmul.f32 %v3023_v36, %v3023_v36 }
 0x84d   : > { %3034 = vadd.xlane.f32.xlu0 %v3027_v57  ;;  %v4792_v57 = vld [vmem:[%s5265_s17 + $0x38] sm:$0xff]  }
 0x8d2   : > { %v3029_v12 = vpop.xlane.xlu1 %3028 }
 0x8d3   : > { %v3036_v34 = vmul.f32 0.0078125, %v3029_v12 }
 0x8d4   : > { %v3031_v15 = vpop.xlane.xlu0 %3030 }
 0x8d5   : > { %v3040_v14 = vadd.f32 1e-12, %v3036_v34  ;;  %v3037_v37 = vmul.f32 0.0078125, %v3031_v15 }
 0x8d6   : > { %v3033_v32 = vpop.xlane.xlu1 %3032 }
 0x8d7   : > { %4857 = vrsqrt.f32 %v3040_v14  ;;  %v3041_v50 = vadd.f32 1e-12, %v3037_v37  ;;  %v3038_v40 = vmul.f32 0.0078125, %v3033_v32 }
 0x8d9   : > { %4859 = vrsqrt.f32 %v3041_v50  ;;  %v3042_v16 = vadd.f32 1e-12, %v3038_v40 }
 0x8da   : > { %v3035_v45 = vpop.xlane.xlu0 %3034 }
 0x8db   : > { %4861 = vrsqrt.f32 %v3042_v16  ;;  %v3039_v35 = vmul.f32 0.0078125, %v3035_v45 }
 0x8dd   : > { %v3043_v6 = vadd.f32 1e-12, %v3039_v35 }
 0x8df   : > { %4863 = vrsqrt.f32 %v3043_v6 }
 0x8e1   : > { %v4858_v0 = vpop.eup %4857 }
 0x8e2   : > { %v3048_v23 = vmul.f32 %v4858_v0, %v3020_v5  ;;  %v4779_v5 = vld [vmem:[%s5265_s17 + $0x48] sm:$0xff]  }
 0x8e3   : > { %v4860_v46 = vpop.eup %4859  ;;  %4253 = vmatprep.subr.bf16.mxu0 %v4779_v5 }
 0x8e4   : > { %v3049_v47 = vmul.f32 %v4860_v46, %v3021_v42  ;;  %v3058_v51 = vmul.f32 %v4104_v20, %v3048_v23  ;;  %4254 = vmatpush3.bf16.msra.mxu0 %v4780_v7  ;;  %v4783_v42 = vld [vmem:[%s5265_s17 + $0x58] sm:$0xff]  }
 0x8e5   : > { %v4862_v41 = vpop.eup %4861 }
 0x8e6   : > { %v3059_v60 = vmul.f32 %v4104_v20, %v3049_v47  ;;  %v5704_v53 = vadd.f32 %v4105_v29, %v3058_v51  ;;  %v3050_v58 = vmul.f32 %v4862_v41, %v3022_v43  ;;  %v4786_v43 = vld [vmem:[%s5265_s17 + $0x20] sm:$0xff]  }
 0x8e8   : > { %v5706_v33 = vadd.f32 %v4105_v29, %v3059_v60  ;;  %v3060_v56 = vmul.f32 %v4104_v20, %v3050_v58 }
 0x8e9   : > { %v4864_v61 = vpop.eup %4863 }
 0x8ea   : > { %v3072_v48 = vpack.c.bf16 %v5706_v33, %v5704_v53  ;;  %v3051_v62 = vmul.f32 %v4864_v61, %v3023_v36  ;;  %v5713_v3 = vadd.f32 %v4105_v29, %v3060_v56  ;;  %v4791_v36 = vld [vmem:[%s5265_s17 + $0x78] sm:$0xff]  }
 0x8ec   : > { %3215 = vmatmul.mubr.bf16.vlgmr.msra.gmra.mrb[28].mxu1 %v3072_v48  ;;  %v3061_v1 = vmul.f32 %v4104_v20, %v3051_v62 }
 0x8ed   : > { %3224 = vmatprep.mubr.bf16.mxu1 %v5021_v52  ;;  %v4781_v52 = vld [vmem:[%s5265_s17 + $0x50] sm:$0xff]  }
 0x8ee   : > { %v5711_v2 = vadd.f32 %v4105_v29, %v3061_v1  ;;  %4255 = vmatprep.subr.bf16.mxu0 %v4781_v52 }
 0x8ef   : > { %4256 = vmatpush3.bf16.msra.mxu0 %v4782_v10 }
 0x8f0   : > { %v3073_v4 = vpack.c.bf16 %v5711_v2, %v5713_v3  ;;  %4257 = vmatprep.subr.bf16.mxu0 %v4783_v42 }
 0x8f3   : > { %4258 = vmatpush3.bf16.msra.mxu0 %v4784_v49 }
 0x8f4   : > { %3225 = vmatmul.mubr.bf16.gmra.mrb[32].mxu1 %v3073_v4  ;;  %4259 = vmatprep.subr.bf16.mxu0 %v4785_v44 }
 0x8f7   : > { %4260 = vmatpush3.bf16.msra.mxu0 %v4786_v43 }
 0x8f8   : > { %4261 = vmatprep.subr.bf16.mxu0 %v4787_v11 }
 0x8fb   : > { %4262 = vmatpush3.bf16.msra.mxu0 %v4788_v13 }
 0x8fc   : > { %4263 = vmatprep.subr.bf16.mxu0 %v4789_v22 }
 0x8ff   : > { %4264 = vmatpush3.bf16.msra.mxu0 %v4790_v54 }
 0x900   : > { %4265 = vmatprep.subr.bf16.mxu0 %v4791_v36 }
 0x903   : > { %4266 = vmatpush3.bf16.msra.mxu0 %v4792_v57 }
 0x9bf   : > { %v3216_v38 = vpop.f32.mrb[28].mxu1 }
 0x9c0   : > { %v5738_v63 = vadd.f32 %v3216_v38, %v3095_v39  ;;  %v3218_v59 = vpop.f32.mrb[29].mxu1 }
 0x9c1   : > { %v5740_v27 = vadd.f32 %v3218_v59, %v3099_v26  ;;  %v3220_v28 = vpop.f32.mrb[30].mxu1 }
 0x9c2   : > { %v3235_v55 = vmul.f32 %v5738_v63, %v5738_v63  ;;  %v5744_v8 = vadd.f32 %v3220_v28, %v3095_v39  ;;  %v3222_v9 = vpop.f32.mrb[31].mxu1 }
 0x9c3   : > { %v3236_v31 = vmul.f32 %v5740_v27, %v5740_v27  ;;  %v5748_v19 = vadd.f32 %v3222_v9, %v3099_v26 }
 0x9c4   : > { %v3243_v18 = vmul.f32 %v3235_v55, %v5738_v63  ;;  %v3237_v21 = vmul.f32 %v5744_v8, %v5744_v8 }
 0x9c5   : > { %v3244_v12 = vmul.f32 %v3236_v31, %v5740_v27  ;;  %v3238_v34 = vmul.f32 %v5748_v19, %v5748_v19 }
 0x9c6   : > { %v3251_v15 = vmul.f32 0.044715, %v3243_v18  ;;  %v3245_v14 = vmul.f32 %v3237_v21, %v5744_v8 }
 0x9c7   : > { %v3252_v37 = vmul.f32 0.044715, %v3244_v12  ;;  %v3246_v32 = vmul.f32 %v3238_v34, %v5748_v19  ;;  %v3226_v50 = vpop.f32.mrb[32].mxu1 }
 0x9c8   : > { %v3259_v40 = vadd.f32 %v3251_v15, %v5738_v63  ;;  %v3253_v16 = vmul.f32 0.044715, %v3245_v14  ;;  %v5759_v45 = vadd.f32 %v3226_v50, %v3095_v39  ;;  %v3228_v35 = vpop.f32.mrb[33].mxu1 }
 0x9c9   : > { %v3260_v6 = vadd.f32 %v3252_v37, %v5740_v27  ;;  %v3254_v0 = vmul.f32 0.044715, %v3246_v32  ;;  %v5762_v20 = vadd.f32 %v3228_v35, %v3099_v26  ;;  %v3230_v23 = vpop.f32.mrb[34].mxu1 }
 0x9ca   : > { %v3267_v46 = vmul.f32 0.7978846, %v3259_v40  ;;  %v3261_v47 = vadd.f32 %v3253_v16, %v5744_v8  ;;  %v3239_v51 = vmul.f32 %v5759_v45, %v5759_v45  ;;  %v5767_v41 = vadd.f32 %v3230_v23, %v3095_v39  ;;  %v3232_v29 = vpop.f32.mrb[35].mxu1 }
 0x9cb   : > { %v3268_v60 = vmul.f32 0.7978846, %v3260_v6  ;;  %v3262_v58 = vadd.f32 %v3254_v0, %v5748_v19  ;;  %v3240_v61 = vmul.f32 %v5762_v20, %v5762_v20  ;;  %v5772_v48 = vadd.f32 %v3232_v29, %v3099_v26 }
 0x9cc   : > { %4865 = vtanh.f32 %v3267_v46  ;;  %v3269_v62 = vmul.f32 0.7978846, %v3261_v47  ;;  %v3247_v56 = vmul.f32 %v3239_v51, %v5759_v45  ;;  %v3241_v1 = vmul.f32 %v5767_v41, %v5767_v41 }
 0x9cd   : > { %4867 = vtanh.f32 %v3268_v60  ;;  %v3270_v4 = vmul.f32 0.7978846, %v3262_v58  ;;  %v3248_v30 = vmul.f32 %v3240_v61, %v5762_v20  ;;  %v3242_v24 = vmul.f32 %v5772_v48, %v5772_v48 }
 0x9ce   : > { %4869 = vtanh.f32 %v3269_v62  ;;  %v3255_v5 = vmul.f32 0.044715, %v3247_v56  ;;  %v3249_v7 = vmul.f32 %v3241_v1, %v5767_v41  ;;  %v4122_v1 = vld [vmem:[%s817_s28] ss:$0 sm:$0xff] }
 0x9cf   : > { %4871 = vtanh.f32 %v3270_v4  ;;  %v3256_v52 = vmul.f32 0.044715, %v3248_v30  ;;  %v3250_v10 = vmul.f32 %v3242_v24, %v5772_v48 }
 0x9d0   : > { %v3263_v42 = vadd.f32 %v3255_v5, %v5759_v45  ;;  %v3257_v49 = vmul.f32 0.044715, %v3249_v7 }
 0x9d1   : > { %v3264_v44 = vadd.f32 %v3256_v52, %v5762_v20  ;;  %v3258_v43 = vmul.f32 0.044715, %v3250_v10 }
 0x9d2   : > { %v3271_v11 = vmul.f32 0.7978846, %v3263_v42  ;;  %v3265_v13 = vadd.f32 %v3257_v49, %v5767_v41 }
 0x9d3   : > { %v3272_v22 = vmul.f32 0.7978846, %v3264_v44  ;;  %v3266_v54 = vadd.f32 %v3258_v43, %v5772_v48 }
 0x9d4   : > { %4873 = vtanh.f32 %v3271_v11  ;;  %v3273_v36 = vmul.f32 0.7978846, %v3265_v13 }
 0x9d5   : > { %4875 = vtanh.f32 %v3272_v22  ;;  %v3274_v57 = vmul.f32 0.7978846, %v3266_v54 }
 0x9d6   : > { %v4866_v25 = vpop.eup %4865  ;;  %4877 = vtanh.f32 %v3273_v36 }
 0x9d7   : > { %v4868_v39 = vpop.eup %4867  ;;  %v3283_v26 = vadd.f32 1.0, %v4866_v25  ;;  %4879 = vtanh.f32 %v3274_v57 }
 0x9d8   : > { %v4870_v38 = vpop.eup %4869  ;;  %v3284_v59 = vadd.f32 1.0, %v4868_v39 }
 0x9d9   : > { %v4872_v28 = vpop.eup %4871  ;;  %v3291_v55 = vmul.f32 0.5, %v3283_v26  ;;  %v3285_v9 = vadd.f32 1.0, %v4870_v38 }
 0x9da   : > { %v3286_v31 = vadd.f32 1.0, %v4872_v28  ;;  %v3292_v18 = vmul.f32 0.5, %v3284_v59 }
 0x9db   : > { %v3293_v21 = vmul.f32 0.5, %v3285_v9  ;;  %v3299_v34 = vmul.f32 %v3291_v55, %v5738_v63 }
 0x9dc   : > { %v3294_v12 = vmul.f32 0.5, %v3286_v31  ;;  %v3300_v37 = vmul.f32 %v3292_v18, %v5740_v27 }
 0x9dd   : > { %v3301_v15 = vmul.f32 %v3293_v21, %v5744_v8 }
 0x9de   : > { %v4874_v14 = vpop.eup %4873  ;;  %v3302_v32 = vmul.f32 %v3294_v12, %v5748_v19 }
 0x9df   : > { %v4876_v50 = vpop.eup %4875  ;;  %v3307_v40 = vpack.c.bf16 %v3301_v15, %v3299_v34  ;;  %v3287_v16 = vadd.f32 1.0, %v4874_v14 }
 0x9e0   : > { %v4878_v35 = vpop.eup %4877  ;;  %v3308_v6 = vpack.c.bf16 %v3302_v32, %v3300_v37  ;;  %v3288_v0 = vadd.f32 1.0, %v4876_v50 }
 0x9e1   : > { %v4880_v23 = vpop.eup %4879  ;;  %v3289_v46 = vadd.f32 1.0, %v4878_v35  ;;  %v3295_v47 = vmul.f32 0.5, %v3287_v16 }
 0x9e2   : > { %3478 = vmatprep.mubr.bf16.mxu0 %v3308_v6  ;;  %v3290_v51 = vadd.f32 1.0, %v4880_v23  ;;  %v3296_v63 = vmul.f32 0.5, %v3288_v0  ;;  %v4139_v23 = vld [vmem:[%s820_s2] ss:$0 sm:$0xff]  ;;  %s5911_s2 = sld [smem:[#allocation22_spill]] (!%p4141_p10) }
 0x9e3   : > { %3479 = vmatmul.mubr.bf16.vlgmr.msra.gmra.mrb[24].mxu0 %v3307_v40  ;;  %v3297_v8 = vmul.f32 0.5, %v3289_v46  ;;  %v3303_v27 = vmul.f32 %v3295_v47, %v5759_v45 }
 0x9e4   : > { %v3298_v29 = vmul.f32 0.5, %v3290_v51  ;;  %v3304_v60 = vmul.f32 %v3296_v63, %v5762_v20  ;;  %v4140_v51 = vld [vmem:[%s823_s10] ss:$0 sm:$0xff] }
 0x9e5   : > { %v3305_v19 = vmul.f32 %v3297_v8, %v5767_v41 }
 0x9e6   : > { %v3306_v58 = vmul.f32 %v3298_v29, %v5772_v48 }
 0x9e7   : > { %v3309_v61 = vpack.c.bf16 %v3305_v19, %v3303_v27 }
 0x9e8   : > { %v3310_v62 = vpack.c.bf16 %v3306_v58, %v3304_v60 }
 0x9ea   : > { %3486 = vmatprep.mubr.bf16.mxu0 %v3310_v62 }
 0x9eb   : > { %3487 = vmatmul.mubr.bf16.gmra.mrb[28].mxu0 %v3309_v61 }
 0xab6   : > { %v4267_v56 = vpop.f32.mrb[24].mxu0 }
 0xab7   : > { %v4268_v4 = vpop.f32.mrb[25].mxu0 }
 0xab8   : > { %v4269_v30 = vadd.f32 %v4268_v4, %v4267_v56  ;;  %v4270_v24 = vpop.f32.mrb[26].mxu0 }
 0xab9   : > { %v4271_v45 = vpop.f32.mrb[27].mxu0 }
 0xaba   : > { %v3481_v5 = vadd.f32 %v4269_v30, %v4122_v1  ;;  %v4272_v41 = vadd.f32 %v4271_v45, %v4270_v24  ;;  %v4893_v24 = vld [vmem:[#allocation3] sm:$0xff] (!%p4141_p10)   ;;  %v5025_v45 = vmov (!%p4141_p10), 0.0  }
 0xabb   : > { %4449 = vmatprep.subr.bf16.mxu0 (!%p4141_p10), %v5025_v45  ;;  %4469 = vmatprep.subr.bf16.mxu1 (!%p4141_p10), %v5025_v45 }
 0xabc   : > { %v3484_v7 = vadd.f32 %v4272_v41, %v4122_v1  ;;  %v3495_v20 = vadd.f32 %v3481_v5, %v5704_v53  ;;  %4450 = vmatpush3.bf16.msra.mxu0 (!%p4141_p10), %v4893_v24  ;;  %v4894_v5 = vld [vmem:[#allocation3 + $0x8] sm:$0xff] (!%p4141_p10)   ;;  %4465 = vmatprep.mubr.msk.bf16.mxu0 (!%p4141_p10), %vm5026_vm5, %v5025_v45  ;;  %v4895_v41 = vld [vmem:[#allocation3 + $0x10] sm:$0xff] (!%p4141_p10)  }
 0xabd   : > { %4451 = vmatprep.subr.bf16.mxu0 (!%p4141_p10), %v5025_v45  ;;  %4485 = vmatprep.mubr.msk.bf16.mxu1 (!%p4141_p10), %vm5026_vm5, %v5025_v45 }
 0xabe   : > { %3501 = vadd.xlane.f32.xlu1 %v3495_v20  ;;  %v4273_v48 = vpop.f32.mrb[28].mxu0  ;;  %v3496_v52 = vadd.f32 %v3484_v7, %v5706_v33  ;;  %v4901_v7 = vld [vmem:[#allocation6] sm:$0xff] (!%p4141_p10)  }
 0xabf   : > { %v4274_v10 = vpop.f32.mrb[29].mxu0  ;;  %4470 = vmatpush3.bf16.msra.mxu1 (!%p4141_p10), %v4901_v7 }
 0xac0   : > { %v4275_v42 = vadd.f32 %v4274_v10, %v4273_v48  ;;  %3503 = vadd.xlane.f32.xlu0 %v3496_v52  ;;  %v4276_v49 = vpop.f32.mrb[30].mxu0  ;;  %4452 = vmatpush3.bf16.msra.mxu0 (!%p4141_p10), %v4894_v5  ;;  %v4902_v48 = vld [vmem:[#allocation6 + $0x8] sm:$0xff] (!%p4141_p10)   ;;  %v4903_v10 = vld [vmem:[#allocation6 + $0x10] sm:$0xff] (!%p4141_p10)  }
 0xac1   : > { %v4277_v44 = vpop.f32.mrb[31].mxu0  ;;  %4453 = vmatprep.subr.bf16.mxu0 (!%p4141_p10), %v5025_v45  ;;  %4471 = vmatprep.subr.bf16.mxu1 (!%p4141_p10), %v5025_v45 }
 0xac2   : > { %v3489_v43 = vadd.f32 %v4275_v42, %v4122_v1  ;;  %v4278_v11 = vadd.f32 %v4277_v44, %v4276_v49  ;;  %v4898_v42 = vld [vmem:[#allocation3 + $0x28] sm:$0xff] (!%p4141_p10)   ;;  %v4904_v49 = vld [vmem:[#allocation6 + $0x18] sm:$0xff] (!%p4141_p10)   ;;  %v4899_v44 = vld [vmem:[#allocation3 + $0x30] sm:$0xff] (!%p4141_p10)  }
 0xac3   : > { %4472 = vmatpush3.bf16.msra.mxu1 (!%p4141_p10), %v4902_v48 }
 0xac4   : > { %v3492_v13 = vadd.f32 %v4278_v11, %v4122_v1  ;;  %v3497_v22 = vadd.f32 %v3489_v43, %v5713_v3  ;;  %4454 = vmatpush3.bf16.msra.mxu0 (!%p4141_p10), %v4895_v41  ;;  %4473 = vmatprep.subr.bf16.mxu1 (!%p4141_p10), %v5025_v45  ;;  %v4900_v11 = vld [vmem:[#allocation3 + $0x38] sm:$0xff] (!%p4141_p10)  }
 0xac5   : > { %4455 = vmatprep.subr.bf16.mxu0 (!%p4141_p10), %v5025_v45 }
 0xac6   : > { %3505 = vadd.xlane.f32.xlu1 %v3497_v22  ;;  %v3498_v54 = vadd.f32 %v3492_v13, %v5711_v2 }
 0xac7   : > { %4474 = vmatpush3.bf16.msra.mxu1 (!%p4141_p10), %v4903_v10 }
 0xac8   : > { %3507 = vadd.xlane.f32.xlu0 %v3498_v54  ;;  %4475 = vmatprep.subr.bf16.mxu1 (!%p4141_p10), %v5025_v45 }
 0xacb   : > { %4476 = vmatpush3.bf16.msra.mxu1 (!%p4141_p10), %v4904_v49 }
 0xacc   : > { %4477 = vmatprep.subr.bf16.mxu1 (!%p4141_p10), %v5025_v45 }
 0xb4b   : > { %v3502_v36 = vpop.xlane.xlu1 %3501 }
 0xb4c   : > { %v3509_v53 = vmul.f32 0.0078125, %v3502_v36  ;;  %v4906_v36 = vld [vmem:[#allocation6 + $0x28] sm:$0xff] (!%p4141_p10)  }
 0xb4d   : > { %v3504_v57 = vpop.xlane.xlu0 %3503 }
 0xb4e   : > { %v3513_v25 = vsub.f32 %v3495_v20, %v3509_v53  ;;  %v3510_v39 = vmul.f32 0.0078125, %v3504_v57  ;;  %v4896_v20 = vld [vmem:[#allocation3 + $0x18] sm:$0xff] (!%p4141_p10)   ;;  %v4907_v53 = vld [vmem:[#allocation6 + $0x30] sm:$0xff] (!%p4141_p10)  }
 0xb4f   : > { %4456 = vmatpush3.bf16.msra.mxu0 (!%p4141_p10), %v4896_v20  ;;  %v4908_v57 = vld [vmem:[#allocation6 + $0x38] sm:$0xff] (!%p4141_p10)  }
 0xb50   : > { %v3514_v33 = vsub.f32 %v3496_v52, %v3510_v39  ;;  %v3517_v26 = vmul.f32 %v3513_v25, %v3513_v25  ;;  %v4897_v52 = vld [vmem:[#allocation3 + $0x20] sm:$0xff] (!%p4141_p10)   ;;  %4457 = vmatprep.subr.bf16.mxu0 (!%p4141_p10), %v5025_v45 }
 0xb52   : > { %3521 = vadd.xlane.f32.xlu1 %v3517_v26  ;;  %v3518_v38 = vmul.f32 %v3514_v33, %v3514_v33 }
 0xb53   : > { %v3506_v59 = vpop.xlane.xlu1 %3505  ;;  %4458 = vmatpush3.bf16.msra.mxu0 (!%p4141_p10), %v4897_v52 }
 0xb54   : > { %v3511_v28 = vmul.f32 0.0078125, %v3506_v59  ;;  %3523 = vadd.xlane.f32.xlu0 %v3518_v38  ;;  %4459 = vmatprep.subr.bf16.mxu0 (!%p4141_p10), %v5025_v45 }
 0xb55   : > { %v3508_v55 = vpop.xlane.xlu0 %3507 }
 0xb56   : > { %v3515_v9 = vsub.f32 %v3497_v22, %v3511_v28  ;;  %v3512_v31 = vmul.f32 0.0078125, %v3508_v55 }
 0xb57   : > { %4460 = vmatpush3.bf16.msra.mxu0 (!%p4141_p10), %v4898_v42 }
 0xb58   : > { %v3516_v3 = vsub.f32 %v3498_v54, %v3512_v31  ;;  %v3519_v18 = vmul.f32 %v3515_v9, %v3515_v9  ;;  %4461 = vmatprep.subr.bf16.mxu0 (!%p4141_p10), %v5025_v45  ;;  %v4905_v54 = vld [vmem:[#allocation6 + $0x20] sm:$0xff] (!%p4141_p10)  }
 0xb59   : > { %4478 = vmatpush3.bf16.msra.mxu1 (!%p4141_p10), %v4905_v54  ;;  %v4151_v31 = vld [vmem:[%s5912_s4] ss:$0 sm:$0xff] (!%p4141_p10) }
 0xb5a   : > { %3525 = vadd.xlane.f32.xlu1 %v3519_v18  ;;  %v3520_v2 = vmul.f32 %v3516_v3, %v3516_v3  ;;  %4479 = vmatprep.subr.bf16.mxu1 (!%p4141_p10), %v5025_v45 }
 0xb5b   : > { %4462 = vmatpush3.bf16.msra.mxu0 (!%p4141_p10), %v4899_v44 }
 0xb5c   : > { %3527 = vadd.xlane.f32.xlu0 %v3520_v2  ;;  %4463 = vmatprep.subr.bf16.mxu0 (!%p4141_p10), %v5025_v45 }
 0xb5d   : > { %4480 = vmatpush3.bf16.msra.mxu1 (!%p4141_p10), %v4906_v36 }
 0xb5e   : > { %4481 = vmatprep.subr.bf16.mxu1 (!%p4141_p10), %v5025_v45 }
 0xb5f   : > { %4464 = vmatpush3.bf16.msra.mxu0 (!%p4141_p10), %v4900_v11 }
 0xb61   : > { %4482 = vmatpush3.bf16.msra.mxu1 (!%p4141_p10), %v4907_v53 }
 0xb62   : > { %4483 = vmatprep.subr.bf16.mxu1 (!%p4141_p10), %v5025_v45 }
 0xb65   : > { %4484 = vmatpush3.bf16.msra.mxu1 (!%p4141_p10), %v4908_v57 }
 0xbdf   : > { %v3522_v21 = vpop.xlane.xlu1 %3521 }
 0xbe0   : > { %v3529_v12 = vmul.f32 0.0078125, %v3522_v21 }
 0xbe1   : > { %v3524_v34 = vpop.xlane.xlu0 %3523 }
 0xbe2   : > { %v3533_v15 = vadd.f32 1e-12, %v3529_v12  ;;  %v3530_v14 = vmul.f32 0.0078125, %v3524_v34 }
 0xbe4   : > { %4881 = vrsqrt.f32 %v3533_v15  ;;  %v3534_v37 = vadd.f32 1e-12, %v3530_v14 }
 0xbe6   : > { %4883 = vrsqrt.f32 %v3534_v37 }
 0xbe7   : > { %v3526_v32 = vpop.xlane.xlu1 %3525 }
 0xbe8   : > { %v3531_v50 = vmul.f32 0.0078125, %v3526_v32 }
 0xbe9   : > { %v3528_v40 = vpop.xlane.xlu0 %3527 }
 0xbea   : > { %v3535_v16 = vadd.f32 1e-12, %v3531_v50  ;;  %v3532_v35 = vmul.f32 0.0078125, %v3528_v40 }
 0xbec   : > { %4885 = vrsqrt.f32 %v3535_v16  ;;  %v3536_v6 = vadd.f32 1e-12, %v3532_v35 }
 0xbee   : > { %v4882_v0 = vpop.eup %4881  ;;  %4887 = vrsqrt.f32 %v3536_v6 }
 0xbef   : > { %v3541_v46 = vmul.f32 %v4882_v0, %v3513_v25  ;;  %v4142_v25 = vld [vmem:[%s5911_s2] ss:$0 sm:$0xff] (!%p4141_p10) }
 0xbf0   : > { %v4884_v47 = vpop.eup %4883 }
 0xbf1   : > { %v3551_v63 = vmul.f32 %v4139_v23, %v3541_v46  ;;  %v3542_v8 = vmul.f32 %v4884_v47, %v3514_v33 }
 0xbf3   : > { %v3561_v29 = vadd.f32 %v4140_v51, %v3551_v63  ;;  %v3552_v27 = vmul.f32 %v4139_v23, %v3542_v8 }
 0xbf5   : > { %3565 = vst [vmem:[#allocation2] sm:$0xff] %v3561_v29  ;;  %v3562_v19 = vadd.f32 %v4140_v51, %v3552_v27 }
 0xbf6   : > { %v4886_v60 = vpop.eup %4885 }
 0xbf7   : > { %3566 = vst [vmem:[#allocation2 + $0x8] sm:$0xff] %v3562_v19  ;;  %v3543_v58 = vmul.f32 %v4886_v60, %v3515_v9  ;;  %v3804_v9 = vand.u32 (!%p4141_p10), 127, %v944_v17 }
 0xbf8   : > { %v4888_v61 = vpop.eup %4887 }
 0xbf9   : > { %v3553_v62 = vmul.f32 %v4139_v23, %v3543_v58  ;;  %v3544_v56 = vmul.f32 %v4888_v61, %v3516_v3  ;;  %3572 = sbr.rel (%p4141_p10) target bundleno = 3831 (0xef7), region = 116  ;;  %vm3805_vm7 = vcmp.lt.s32.totalorder (!%p4141_p10), %v3804_v9, 4 }
 0xbfb   : > { %v3563_v1 = vadd.f32 %v4140_v51, %v3553_v62  ;;  %v3554_v4 = vmul.f32 %v4139_v23, %v3544_v56 }
 0xbfd   : > { %3567 = vst [vmem:[#allocation2 + $0x10] sm:$0xff] %v3563_v1  ;;  %v3564_v30 = vadd.f32 %v4140_v51, %v3554_v4  ;;  %v3574_v43 = vrot.slane (!%p4141_p10), %v3563_v1, 7 }
 0xbff   : > { %3568 = vst [vmem:[#allocation2 + $0x18] sm:$0xff] %v3564_v30  ;;  %v3577_v13 = vsel (!%p4141_p10), %vm3576_vm6, %v3561_v29, %v3574_v43 }
 0xc00   : > { %v3578_v22 = vpack.c.bf16 %v3577_v13, %v3577_v13 }
 0xc02   : > { %4466 = vmatmul.mubr.bf16.vlgmr.msra.gmra.mrb[0].mxu0 %v3578_v22 }
 0xcd5   : > { %v3684_v39 = vpop.f32.mrb[0].mxu0 }
 0xcd6   : > { %v3685_v33 = vadd.f32 %v4142_v25, %v3684_v39  ;;  %v4467_v26 = vpop.f32.mrb[1].mxu0 }
 0xcd7   : > { %v3687_v38 = vpop.f32.mrb[2].mxu0 }
 0xcd8   : > { %4909 = vtanh.f32 %v3685_v33  ;;  %v4468_v59 = vpop.f32.mrb[3].mxu0 }
 0xce2   : > { %v4910_v28 = vpop.eup %4909 }
 0xce3   : > { %v3691_v55 = vpack.c.bf16 %v4910_v28, %v4910_v28 }
 0xce5   : > { %4486 = vmatmul.mubr.bf16.vlgmr.msra.gmra.mrb[0].mxu1 %v3691_v55 }
 0xdb8   : > { %v3797_v3 = vpop.f32.mrb[0].mxu1 }
 0xdb9   : > { %v3798_v18 = vadd.f32 %v4151_v31, %v3797_v3  ;;  %v4487_v2 = vpop.f32.mrb[1].mxu1 }
 0xdba   : > { %v3800_v21 = vpop.f32.mrb[2].mxu1 }
 0xdbb   : > { %v4488_v12 = vpop.f32.mrb[3].mxu1  ;;  %v3806_v34 = vsel %vm3805_vm7, %v3798_v18, -1e+30 }
 0xdbc   : > { %v3808_v15 = vsel %vm3807_vm8, %v3806_v34, -inf }
 0xdbd   : > { %3809 = vmax.xlane.f32.xlu0 %v3808_v15 }
 0xe4a   : > { %v3810_v14 = vpop.xlane.xlu0 %3809 }
 0xe4b   : > { %v3811_v37 = vsub.f32 %v3806_v34, %v3810_v14 }
 0xe4d   : > { %v3812_v32 = vmul.f32 1.442695, %v3811_v37 }
 0xe4f   : > { %4911 = vpow2.f32 %v3812_v32 }
 0xe59   : > { %v4912_v50 = vpop.eup %4911 }
 0xe5a   : > { %v3814_v17 = vsel %vm3807_vm8, %v4912_v50, 0.0 }
 0xe5b   : > { %3815 = vadd.xlane.f32.xlu0 %v3814_v17 }
 0xee8   : > { %v3816_v40 = vpop.xlane.xlu0 %3815 }
 0xee9   : > { %4913 = vrcp.f32 %v3816_v40 }
 0xef3   : > { %v4914_v16 = vpop.eup %4913 }
 0xef4   : > { %v3818_v35 = vmul.f32 %v4914_v16, %v4912_v50 }
 0xef6   : > { %3819 = vst [vmem:[#allocation8] sm:$0x3] %v3818_v35 }
 0xef7 PF: > { %p4594_p11 = scmp.eq.s32.totalorder %s5139_s22, 1  ;;  %s5027_s3 = smov [#allocation8]  }
 0xef8   : > { %s3827_s30 = sshll.u32 %s5027_s3, 4  ;;  %s3828_s30 = int_to_ptr.vmem [resolvable:$true] %s3827_s30 }
 0xef9   : > { %s4971_s0 = scalar_lea.vmem %s3828_s30, 32  ;;  %p4978_p1 = scmp.lt.s32.totalorder %s3828_s30, %s3828_s30 }
 0xefa   : > { %p4972_p12 = scmp.ne.s32.totalorder %s3828_s30, %s4971_s0  ;;  %p4979_p5 = scmp.lt.s32.totalorder %s4971_s0, %s4971_s0 }
 0xefc   : > { %p4973_p13 = pnand %p4972_p12, %p4594_p11  ;;  %p4980_p7 = por %p4979_p5, %p4978_p1 }
 0xefe   : > { %p4974_p0 = pneg %p4973_p13 }
 0xf00   : > { %p4981_p2 = pnand %p4980_p7, %p4974_p0 }
 0xf02   : > { %4984 = shalt.err (!%p4981_p2)
}
 0xf03   : > { %s5913_s29 = sld [smem:[#allocation25_spill]] }
 0xf09   : > { %s4985_s21 = scalar_lea.hbm %s5913_s29, 32 }
 0xf0a   : > { %p4986_p8 = scmp.ne.s32.totalorder %s5913_s29, %s4985_s21  ;;  %p4991_p9 = scmp.lt.u32.totalorder %s4985_s21, %s5913_s29 }
 0xf0c   : > { %p4987_p3 = pnand %p4986_p8, %p4594_p11 }
 0xf0e   : > { %p4988_p4 = pneg %p4987_p3 }
 0xf10   : > { %p4993_p6 = pnand %p4991_p9, %p4988_p4 }
 0xf12   : > { %4996 = shalt.err (!%p4993_p6)
}
 0xf13   : > { %4580 = dma.vmem_to_hbm [thread:$0]  (%p4594_p11), %s3828_s30, 32, %s5913_s29, [#allocation5]  }
 0xf14   : > { %5010 = dma.done.wait (%p4594_p11), [#allocation5], 32  }
 0xf15   : > { %5012 = vsyncadd (%p4594_p11), [#allocation5], 4294967264 }
 0xf16 PF: > { %s5914_s6 = sld [smem:[#allocation12_spill]] }
 0xf1c   : > { %s33_s1 = sadd.s32 1, %s5914_s6  }
 0xf1d   : > { %p30_p10 = scmp.ge.s32.totalorder %s33_s1, 4  }
 0xf1f   :  { %32 = sbr.rel (!%p30_p10) target bundleno = 17 (0x11), region = 177 }
 0xf26   :  { %3840 = vsyncpa [#allocation4], 1 }
 0xf27   :  { %3842 = vsyncpa [#allocation4 + $0x1], 1 }
 0xf28   :  { %3843 = vsyncpa [#allocation7], 1 }
 0xf29   :  { %3844 = vsyncpa [#allocation5], 1 }
 0xf2a   :  { %3846 = vsyncpa [#allocation5 + $0x1], 1 }

</bundles_post_ra>
